<compile_context>
chip_gen: v7x
topology: tpu7x:2x2x1
jax: 0.10.0
libtpu: 0.0.40
codegen_flags: <defaults>
</compile_context>

<pallas_src>
import functools

import jax
import jax.numpy as jnp
from jax import lax
from jax.experimental import pallas as pl
from jax.experimental.pallas import tpu as pltpu


def _round_up(x, m):
    return ((x + m - 1) // m) * m


def _padded_bytes(shape, dtype):
    """Physical VMEM footprint: last dim -> 128 lanes, 2nd-last -> dtype sublane tile."""
    itemsize = jnp.dtype(dtype).itemsize
    sub = 32 // itemsize                      # 8 rows (f32), 16 (bf16), 32 (int8/fp8)
    if len(shape) == 1:
        lead, rows, cols = 1, 1, shape[0]
    else:
        lead = 1
        for d in shape[:-2]:
            lead *= d
        rows, cols = shape[-2], shape[-1]
    return lead * _round_up(max(rows, 1), sub) * _round_up(max(cols, 1), 128) * itemsize


def _vmem_capacity_bytes():
    try:
        info = pltpu.get_tpu_info()
        for attr in ("vmem_capacity_bytes", "vmem_size_bytes", "vmem_bytes"):
            v = getattr(info, attr, None)
            if v:
                return int(v)
    except Exception:
        pass
    return 64 * 1024 * 1024                   # conservative (v7x per-TC VMEM)


def _auto_unroll(carry_elems_f32, cap, trip):
    """Unroll factor limited by how many vregs the loop carry occupies."""
    vregs = max(1, carry_elems_f32 // 1024)
    return int(max(1, min(cap, trip, max(1, 40 // vregs))))


def _rsnn_alif_kernel(cur_ref, w_in_ref, w_rec_ref, w_fused_ref,
                      yo_ref, critic_ref,
                      x_spk_ref, i_in_ref, z_hist_ref, r_ref, *,
                      n_steps, chunk, n_chunks, n_out, n_out_p,
                      thr, alpha, kappa, rho, beta,
                      enc_dt_tau_mem, enc_v_th,
                      li_dt_tau_mem, li_dt_tau_syn,
                      enc_unroll, rec_unroll, ro_unroll):
    tb, n_in = cur_ref.shape
    n_rec = w_rec_ref.shape[0]
    md = w_rec_ref.dtype                       # matmul operand dtype (bf16 or f32)

    cur = cur_ref[...].astype(jnp.float32)     # [tb, n_in] constant encoder current

    def chunk_body(c, carry):
        v_enc, v, z, adapt, vo, cv, ci, m_vo, m_cv = carry

        # ---- 1) ConstantCurrentLIFEncoder spikes for this chunk (VPU only) ----
        # norse lif_current_encoder: dv = dt*tau_mem*(v_leak - v + i); threshold; reset.
        def enc_step(s, v_e):
            v_e = v_e + enc_dt_tau_mem * (cur - v_e)
            x_t = (v_e > enc_v_th).astype(jnp.float32)
            row = pl.multiple_of(s * tb, tb)
            x_spk_ref[pl.ds(row, tb), :] = x_t
            return v_e * (1.0 - x_t)

        v_enc = lax.fori_loop(0, chunk, enc_step, v_enc, unroll=enc_unroll)

        # ---- 2) input projection for the whole chunk in ONE MXU call ----
        i_in_ref[...] = jnp.dot(x_spk_ref[...].astype(md), w_in_ref[...],
                                preferred_element_type=jnp.float32)

        # ---- 3) serial ALIF recurrence: only z @ w_rec + spike compare per step ----
        def rec_step(s, rc):
            v_c, z_c, a_c = rc
            row = pl.multiple_of(s * tb, tb)
            i_in_t = i_in_ref[pl.ds(row, tb), :]
            v_new = (alpha * v_c
                     + jnp.dot(z_c.astype(md), w_rec_ref[...],
                               preferred_element_type=jnp.float32)
                     + i_in_t
                     - z_c * thr)
            a_new = rho * a_c + z_c
            z_new = (v_new > thr + beta * a_new).astype(jnp.float32)
            # TODO(synk): nn.Dropout(p=0.5) is identity in eval mode; training RNG mask not modeled.
            z_hist_ref[pl.ds(row, tb), :] = z_new
            return (v_new, z_new, a_new)

        v, z, adapt = lax.fori_loop(0, chunk, rec_step, (v, z, adapt),
                                    unroll=rec_unroll)

        # ---- 4) fused output+critic readout for the whole chunk in ONE MXU call ----
        # lanes [0:n_out_p) -> w_out^T (zero padded), lane n_out_p -> w_critic^T.
        r_ref[...] = jnp.dot(z_hist_ref[...].astype(md), w_fused_ref[...],
                             preferred_element_type=jnp.float32)

        # ---- 5) kappa-leaky vo, norse LILinearCell critic, masked running max ----
        def ro_step(s, oc):
            vo_c, cv_c, ci_c, mv_c, mc_c = oc
            row = pl.multiple_of(s * tb, tb)
            r_o = r_ref[pl.ds(row, tb), :n_out_p]       # lane-aligned vo block
            r_c = r_ref[pl.ds(row, tb), n_out_p:]       # lane-aligned critic block
            vo_new = kappa * vo_c + r_o
            i_jump = ci_c + r_c
            cv_new = cv_c + li_dt_tau_mem * (i_jump - cv_c)
            ci_new = i_jump - li_dt_tau_syn * i_jump
            valid = (c * chunk + s) < n_steps           # mask padded timesteps
            mv_c = jnp.where(valid, jnp.maximum(mv_c, vo_new), mv_c)
            mc_c = jnp.where(valid, jnp.maximum(mc_c, cv_new), mc_c)
            return (vo_new, cv_new, ci_new, mv_c, mc_c)

        vo, cv, ci, m_vo, m_cv = lax.fori_loop(0, chunk, ro_step,
                                               (vo, cv, ci, m_vo, m_cv),
                                               unroll=ro_unroll)
        return (v_enc, v, z, adapt, vo, cv, ci, m_vo, m_cv)

    zeros_in = jnp.zeros((tb, n_in), jnp.float32)
    zeros_rec = jnp.zeros((tb, n_rec), jnp.float32)
    zeros_out = jnp.zeros((tb, n_out_p), jnp.float32)
    zeros_crit = jnp.zeros((tb, 128), jnp.float32)
    carry0 = (zeros_in, zeros_rec, zeros_rec, zeros_rec,
              zeros_out, zeros_crit, zeros_crit, zeros_out, zeros_crit)
    carry = lax.fori_loop(0, n_chunks, chunk_body, carry0)
    m_vo, m_cv = carry[7], carry[8]

    # ---- 6) yo = softmax(max_t vo, axis=1); critic_value = max_t critic voltage ----
    # zero-initialized maxima include the reference's all-zero t=0 states in the max.
    m_vo = m_vo[:, :n_out]
    e = jnp.exp(m_vo - jnp.max(m_vo, axis=1, keepdims=True))
    yo_ref[...] = (e / jnp.sum(e, axis=1, keepdims=True)).astype(yo_ref.dtype)
    critic_ref[...] = m_cv[:, :1].astype(critic_ref.dtype)


def rsnn_alif_forward(x, w_in, w_rec, w_out, w_critic_lin, *,
                      n_t, thr, rho, beta,
                      alpha=0.8, kappa=0.8, enc_scale=50.0, dt=1e-3,
                      enc_tau_mem_inv=100.0, enc_v_th=1.0,
                      li_tau_mem_inv=100.0, li_tau_syn_inv=200.0,
                      batch_tile=128, time_chunk=64, time_unroll=8,
                      matmul_dtype=jnp.bfloat16):
    """Functional equivalent of RSNN_ALIF.forward(x, do_training, plot=False).

    batch_tile: max rows per grid step (clamped to the rounded batch, so small batches
    are not padded to 128).  time_chunk: timesteps per in-kernel chunk; auto-shrunk so
    the scratch plan fits VMEM on the current TPU generation.  matmul_dtype=bfloat16
    keeps all accumulation and state in f32; spikes are exact 0/1 in bf16, only weight
    rounding changes.
    """
    assert n_t >= 2, "reference loops n_t - 1 times; need at least one recurrent step"
    n_b, n_feat = x.shape
    n_rec, n_in = w_in.shape
    n_out = w_out.shape[0]
    assert n_in == 2 * n_feat, "encoder concatenates +/- channels: n_in must be 2*n_feat"

    n_steps = n_t - 1
    tb = _round_up(min(int(batch_tile), _round_up(n_b, 8)), 8)
    n_b_p = _round_up(n_b, tb)
    n_rec_p = _round_up(n_rec, 128)
    n_out_p = _round_up(n_out, 128)
    r_w = n_out_p + 128                              # vo block + critic block (lane aligned)
    pad_r = n_rec_p - n_rec

    # glue: get_pos() input currents (relu of +/- scaled obs)
    x = x.astype(jnp.float32)
    cur = jnp.concatenate(
        [jnp.maximum(enc_scale * x, 0.0), jnp.maximum(-enc_scale * x, 0.0)], axis=1)
    cur = jnp.pad(cur, ((0, n_b_p - n_b), (0, 0)))

    # diag-zeroed recurrent weights (matching `w_rec *= 1 - eye`), transposed + padded
    w_rec_masked = w_rec * (1.0 - jnp.eye(n_rec, dtype=w_rec.dtype))
    w_in_t = jnp.pad(jnp.transpose(w_in).astype(matmul_dtype), ((0, 0), (0, pad_r)))
    w_rec_t = jnp.pad(jnp.transpose(w_rec_masked).astype(matmul_dtype),
                      ((0, pad_r), (0, pad_r)))
    # fused readout weights, lane-aligned: [0:n_out) = w_out^T, lane n_out_p = w_critic^T
    w_fused = jnp.zeros((n_rec_p, r_w), matmul_dtype)
    w_fused = w_fused.at[:n_rec, :n_out].set(jnp.transpose(w_out).astype(matmul_dtype))
    w_fused = w_fused.at[:n_rec, n_out_p:n_out_p + 1].set(
        jnp.transpose(w_critic_lin).astype(matmul_dtype))

    # ---- VMEM plan: pick the largest time chunk that fits the generation's budget ----
    vmem_cap = _vmem_capacity_bytes()

    def est_bytes(ck):
        rows = ck * tb
        return (
            # double-buffered pipeline inputs / outputs
            2 * (_padded_bytes((tb, n_in), jnp.float32)
                 + _padded_bytes((n_in, n_rec_p), matmul_dtype)
                 + _padded_bytes((n_rec_p, n_rec_p), matmul_dtype)
                 + _padded_bytes((n_rec_p, r_w), matmul_dtype)
                 + _padded_bytes((tb, n_out), jnp.float32)
                 + _padded_bytes((tb, 1), jnp.float32))
            # single-buffered chunk scratch
            + _padded_bytes((rows, n_in), jnp.float32)
            + 2 * _padded_bytes((rows, n_rec_p), jnp.float32)
            + _padded_bytes((rows, r_w), jnp.float32))

    chunk = max(1, min(int(time_chunk), n_steps))
    budget = int(0.6 * vmem_cap)                     # leave headroom for temporaries
    while chunk > 1 and est_bytes(chunk) > budget:
        chunk = max(1, chunk // 2)
    n_chunks = -(-n_steps // chunk)
    vmem_limit = int(min(vmem_cap,
                         max(32 << 20, int(est_bytes(chunk) * 1.4) + (4 << 20))))

    # unroll capped by live-carry vreg pressure (unroll 1-2 at tb=128, n_rec_p>=128)
    enc_unroll = _auto_unroll(tb * n_in, int(time_unroll), chunk)
    rec_unroll = _auto_unroll(3 * tb * n_rec_p, int(time_unroll), chunk)
    ro_unroll = _auto_unroll(2 * tb * n_out_p + 3 * tb * 128, int(time_unroll), chunk)

    kernel = functools.partial(
        _rsnn_alif_kernel,
        n_steps=n_steps, chunk=chunk, n_chunks=n_chunks,
        n_out=n_out, n_out_p=n_out_p,
        thr=float(thr), alpha=float(alpha), kappa=float(kappa),
        rho=float(rho), beta=float(beta),
        enc_dt_tau_mem=float(dt * enc_tau_mem_inv), enc_v_th=float(enc_v_th),
        li_dt_tau_mem=float(dt * li_tau_mem_inv), li_dt_tau_syn=float(dt * li_tau_syn_inv),
        enc_unroll=enc_unroll, rec_unroll=rec_unroll, ro_unroll=ro_unroll)

    rows = chunk * tb
    scratch_shapes = [
        pltpu.VMEM((rows, n_in), jnp.float32),       # encoder spike train (one chunk)
        pltpu.VMEM((rows, n_rec_p), jnp.float32),    # per-step input currents
        pltpu.VMEM((rows, n_rec_p), jnp.float32),    # per-step recurrent spikes
        pltpu.VMEM((rows, r_w), jnp.float32),        # per-step fused readouts
    ]

    yo, critic_value = pl.pallas_call(
        kernel,
        out_shape=(jax.ShapeDtypeStruct((n_b_p, n_out), jnp.float32),
                   jax.ShapeDtypeStruct((n_b_p, 1), jnp.float32)),
        grid=(n_b_p // tb,),
        in_specs=[pl.BlockSpec((tb, n_in), lambda b: (b, 0)),
                  pl.BlockSpec((n_in, n_rec_p), lambda b: (0, 0)),
                  pl.BlockSpec((n_rec_p, n_rec_p), lambda b: (0, 0)),
                  pl.BlockSpec((n_rec_p, r_w), lambda b: (0, 0))],
        out_specs=(pl.BlockSpec((tb, n_out), lambda b: (b, 0)),
                   pl.BlockSpec((tb, 1), lambda b: (b, 0))),
        scratch_shapes=scratch_shapes,
        compiler_params=pltpu.CompilerParams(
            # "parallel" lets v7x's two TensorCores split batch tiles when the grid has
            # >= 2 steps; with a single tile the kernel is fully serial on one core.
            dimension_semantics=("parallel",),
            vmem_limit_bytes=vmem_limit),
    )(cur, w_in_t, w_rec_t, w_fused)
    return yo[:n_b], critic_value[:n_b]


if __name__ == "__main__":
    # small, forward-consistent shapes
    n_b, n_feat = 2, 4
    n_in = 2 * n_feat          # 8
    n_rec = 32
    n_out = 4
    n_t = 8
    thr, rho, beta = 0.6, 0.95, 0.1
    w_init_gain = (0.5, 0.1, 0.5)

    key = jax.random.PRNGKey(0)
    k_x, k_in, k_rec, k_out, k_crit = jax.random.split(key, 5)

    # deterministic kaiming-normal-style init (std = sqrt(2 / fan_in)), scaled by gains
    w_in = w_init_gain[0] * jax.random.normal(k_in, (n_rec, n_in), jnp.float32) * jnp.sqrt(2.0 / n_in)
    w_rec = w_init_gain[1] * jax.random.normal(k_rec, (n_rec, n_rec), jnp.float32) * jnp.sqrt(2.0 / n_rec)
    w_out = w_init_gain[2] * jax.random.normal(k_out, (n_out, n_rec), jnp.float32) * jnp.sqrt(2.0 / n_rec)
    # norse LILinearCell(n_rec, 1) input_weights: shape [1, n_rec]
    w_critic_lin = jax.random.normal(k_crit, (1, n_rec), jnp.float32) * jnp.sqrt(2.0)

    x = jax.random.normal(k_x, (n_b, n_feat), jnp.float32)

    yo, critic_value = rsnn_alif_forward(
        x, w_in, w_rec, w_out, w_critic_lin,
        n_t=n_t, thr=thr, rho=rho, beta=beta)
    jax.block_until_ready((yo, critic_value))

    assert yo.shape == (n_b, n_out) and critic_value.shape == (n_b, 1)
    assert bool(jnp.all(jnp.isfinite(yo))) and bool(jnp.all(jnp.isfinite(critic_value)))
    assert bool(jnp.allclose(jnp.sum(yo, axis=1), 1.0, atol=1e-5))
    print("KERNEL_OK")
</pallas_src>

<mosaic_0001>
module attributes {stable_mosaic.version = 11 : i64} {
  func.func @_rsnn_alif_kernel(%arg0: i32, %arg1: memref<8x8xf32, #tpu.memory_space<vmem>>, %arg2: memref<8x128xbf16, #tpu.memory_space<vmem>>, %arg3: memref<128x128xbf16, #tpu.memory_space<vmem>>, %arg4: memref<128x256xbf16, #tpu.memory_space<vmem>>, %arg5: memref<8x4xf32, #tpu.memory_space<vmem>>, %arg6: memref<8x1xf32, #tpu.memory_space<vmem>>, %arg7: memref<56x8xf32, #tpu.memory_space<vmem>>, %arg8: memref<56x128xf32, #tpu.memory_space<vmem>>, %arg9: memref<56x128xf32, #tpu.memory_space<vmem>>, %arg10: memref<56x256xf32, #tpu.memory_space<vmem>>) attributes {dimension_semantics = [#tpu.dimension_semantics<parallel>], iteration_bounds = array<i64: 1>, scalar_prefetch = 0 : i64, scratch_operands = 4 : i64, tpu.core_type = #tpu.core_type<tc>, window_params = [{transform_indices = @transform_0, window_bounds = array<i64: 8, 8>}, {pipeline_mode = #tpu.pipeline_mode<synchronous>, transform_indices = @transform_1, window_bounds = array<i64: 8, 128>}, {pipeline_mode = #tpu.pipeline_mode<synchronous>, transform_indices = @transform_2, window_bounds = array<i64: 128, 128>}, {pipeline_mode = #tpu.pipeline_mode<synchronous>, transform_indices = @transform_3, window_bounds = array<i64: 128, 256>}, {transform_indices = @transform_4, window_bounds = array<i64: 8, 4>}, {transform_indices = @transform_5, window_bounds = array<i64: 8, 1>}]} {
    %c0 = arith.constant 0 : index
    %c0_0 = arith.constant 0 : index
    %0 = vector.load %arg1[%c0, %c0_0] : memref<8x8xf32, #tpu.memory_space<vmem>>, vector<8x8xf32>
    %cst = arith.constant 0.000000e+00 : f32
    %1 = vector.broadcast %cst : f32 to vector<8x8xf32>
    %cst_1 = arith.constant 0.000000e+00 : f32
    %2 = vector.broadcast %cst_1 : f32 to vector<8x128xf32>
    %cst_2 = arith.constant 0.000000e+00 : f32
    %3 = vector.broadcast %cst_2 : f32 to vector<8x128xf32>
    %cst_3 = arith.constant 0.000000e+00 : f32
    %4 = vector.broadcast %cst_3 : f32 to vector<8x128xf32>
    %c0_i32 = arith.constant 0 : i32
    %c0_i32_4 = arith.constant 0 : i32
    %5 = arith.subf %0, %1 : vector<8x8xf32>
    %cst_5 = arith.constant 1.000000e-01 : f32
    %6 = vector.broadcast %cst_5 : f32 to vector<8x8xf32>
    %7 = arith.mulf %6, %5 : vector<8x8xf32>
    %8 = arith.addf %1, %7 : vector<8x8xf32>
    %cst_6 = arith.constant 1.000000e+00 : f32
    %9 = vector.broadcast %cst_6 : f32 to vector<8x8xf32>
    %10 = arith.cmpf ogt, %8, %9 : vector<8x8xf32>
    %11 = arith.extui %10 : vector<8x8xi1> to vector<8x8xi32>
    %12 = arith.sitofp %11 : vector<8x8xi32> to vector<8x8xf32>
    %c8_i32 = arith.constant 8 : i32
    %13 = arith.muli %c0_i32_4, %c8_i32 : i32
    %14 = tpu.assume_multiple %13, 8 : i32
    %15 = arith.index_cast %14 : i32 to index
    %c0_7 = arith.constant 0 : index
    %16 = vector.load %arg7[%15, %c0_7] : memref<56x8xf32, #tpu.memory_space<vmem>>, vector<8x8xf32>
    tpu.vector_store %arg7[%15, %c0_7], %12 {strides = array<i32>} : memref<56x8xf32, #tpu.memory_space<vmem>>, vector<8x8xf32>,
    %cst_8 = arith.constant 1.000000e+00 : f32
    %17 = vector.broadcast %cst_8 : f32 to vector<8x8xf32>
    %18 = arith.subf %17, %12 : vector<8x8xf32>
    %19 = arith.mulf %8, %18 : vector<8x8xf32>
    %c1_i32 = arith.constant 1 : i32
    %20 = arith.subf %0, %19 : vector<8x8xf32>
    %cst_9 = arith.constant 1.000000e-01 : f32
    %21 = vector.broadcast %cst_9 : f32 to vector<8x8xf32>
    %22 = arith.mulf %21, %20 : vector<8x8xf32>
    %23 = arith.addf %19, %22 : vector<8x8xf32>
    %cst_10 = arith.constant 1.000000e+00 : f32
    %24 = vector.broadcast %cst_10 : f32 to vector<8x8xf32>
    %25 = arith.cmpf ogt, %23, %24 : vector<8x8xf32>
    %26 = arith.extui %25 : vector<8x8xi1> to vector<8x8xi32>
    %27 = arith.sitofp %26 : vector<8x8xi32> to vector<8x8xf32>
    %c8_i32_11 = arith.constant 8 : i32
    %28 = arith.muli %c1_i32, %c8_i32_11 : i32
    %29 = tpu.assume_multiple %28, 8 : i32
    %30 = arith.index_cast %29 : i32 to index
    %c0_12 = arith.constant 0 : index
    %31 = vector.load %arg7[%30, %c0_12] : memref<56x8xf32, #tpu.memory_space<vmem>>, vector<8x8xf32>
    tpu.vector_store %arg7[%30, %c0_12], %27 {strides = array<i32>} : memref<56x8xf32, #tpu.memory_space<vmem>>, vector<8x8xf32>,
    %cst_13 = arith.constant 1.000000e+00 : f32
    %32 = vector.broadcast %cst_13 : f32 to vector<8x8xf32>
    %33 = arith.subf %32, %27 : vector<8x8xf32>
    %34 = arith.mulf %23, %33 : vector<8x8xf32>
    %c2_i32 = arith.constant 2 : i32
    %35 = arith.subf %0, %34 : vector<8x8xf32>
    %cst_14 = arith.constant 1.000000e-01 : f32
    %36 = vector.broadcast %cst_14 : f32 to vector<8x8xf32>
    %37 = arith.mulf %36, %35 : vector<8x8xf32>
    %38 = arith.addf %34, %37 : vector<8x8xf32>
    %cst_15 = arith.constant 1.000000e+00 : f32
    %39 = vector.broadcast %cst_15 : f32 to vector<8x8xf32>
    %40 = arith.cmpf ogt, %38, %39 : vector<8x8xf32>
    %41 = arith.extui %40 : vector<8x8xi1> to vector<8x8xi32>
    %42 = arith.sitofp %41 : vector<8x8xi32> to vector<8x8xf32>
    %c8_i32_16 = arith.constant 8 : i32
    %43 = arith.muli %c2_i32, %c8_i32_16 : i32
    %44 = tpu.assume_multiple %43, 8 : i32
    %45 = arith.index_cast %44 : i32 to index
    %c0_17 = arith.constant 0 : index
    %46 = vector.load %arg7[%45, %c0_17] : memref<56x8xf32, #tpu.memory_space<vmem>>, vector<8x8xf32>
    tpu.vector_store %arg7[%45, %c0_17], %42 {strides = array<i32>} : memref<56x8xf32, #tpu.memory_space<vmem>>, vector<8x8xf32>,
    %cst_18 = arith.constant 1.000000e+00 : f32
    %47 = vector.broadcast %cst_18 : f32 to vector<8x8xf32>
    %48 = arith.subf %47, %42 : vector<8x8xf32>
    %49 = arith.mulf %38, %48 : vector<8x8xf32>
    %c3_i32 = arith.constant 3 : i32
    %50 = arith.subf %0, %49 : vector<8x8xf32>
    %cst_19 = arith.constant 1.000000e-01 : f32
    %51 = vector.broadcast %cst_19 : f32 to vector<8x8xf32>
    %52 = arith.mulf %51, %50 : vector<8x8xf32>
    %53 = arith.addf %49, %52 : vector<8x8xf32>
    %cst_20 = arith.constant 1.000000e+00 : f32
    %54 = vector.broadcast %cst_20 : f32 to vector<8x8xf32>
    %55 = arith.cmpf ogt, %53, %54 : vector<8x8xf32>
    %56 = arith.extui %55 : vector<8x8xi1> to vector<8x8xi32>
    %57 = arith.sitofp %56 : vector<8x8xi32> to vector<8x8xf32>
    %c8_i32_21 = arith.constant 8 : i32
    %58 = arith.muli %c3_i32, %c8_i32_21 : i32
    %59 = tpu.assume_multiple %58, 8 : i32
    %60 = arith.index_cast %59 : i32 to index
    %c0_22 = arith.constant 0 : index
    %61 = vector.load %arg7[%60, %c0_22] : memref<56x8xf32, #tpu.memory_space<vmem>>, vector<8x8xf32>
    tpu.vector_store %arg7[%60, %c0_22], %57 {strides = array<i32>} : memref<56x8xf32, #tpu.memory_space<vmem>>, vector<8x8xf32>,
    %cst_23 = arith.constant 1.000000e+00 : f32
    %62 = vector.broadcast %cst_23 : f32 to vector<8x8xf32>
    %63 = arith.subf %62, %57 : vector<8x8xf32>
    %64 = arith.mulf %53, %63 : vector<8x8xf32>
    %c4_i32 = arith.constant 4 : i32
    %65 = arith.subf %0, %64 : vector<8x8xf32>
    %cst_24 = arith.constant 1.000000e-01 : f32
    %66 = vector.broadcast %cst_24 : f32 to vector<8x8xf32>
    %67 = arith.mulf %66, %65 : vector<8x8xf32>
    %68 = arith.addf %64, %67 : vector<8x8xf32>
    %cst_25 = arith.constant 1.000000e+00 : f32
    %69 = vector.broadcast %cst_25 : f32 to vector<8x8xf32>
    %70 = arith.cmpf ogt, %68, %69 : vector<8x8xf32>
    %71 = arith.extui %70 : vector<8x8xi1> to vector<8x8xi32>
    %72 = arith.sitofp %71 : vector<8x8xi32> to vector<8x8xf32>
    %c8_i32_26 = arith.constant 8 : i32
    %73 = arith.muli %c4_i32, %c8_i32_26 : i32
    %74 = tpu.assume_multiple %73, 8 : i32
    %75 = arith.index_cast %74 : i32 to index
    %c0_27 = arith.constant 0 : index
    %76 = vector.load %arg7[%75, %c0_27] : memref<56x8xf32, #tpu.memory_space<vmem>>, vector<8x8xf32>
    tpu.vector_store %arg7[%75, %c0_27], %72 {strides = array<i32>} : memref<56x8xf32, #tpu.memory_space<vmem>>, vector<8x8xf32>,
    %cst_28 = arith.constant 1.000000e+00 : f32
    %77 = vector.broadcast %cst_28 : f32 to vector<8x8xf32>
    %78 = arith.subf %77, %72 : vector<8x8xf32>
    %79 = arith.mulf %68, %78 : vector<8x8xf32>
    %c5_i32 = arith.constant 5 : i32
    %80 = arith.subf %0, %79 : vector<8x8xf32>
    %cst_29 = arith.constant 1.000000e-01 : f32
    %81 = vector.broadcast %cst_29 : f32 to vector<8x8xf32>
    %82 = arith.mulf %81, %80 : vector<8x8xf32>
    %83 = arith.addf %79, %82 : vector<8x8xf32>
    %cst_30 = arith.constant 1.000000e+00 : f32
    %84 = vector.broadcast %cst_30 : f32 to vector<8x8xf32>
    %85 = arith.cmpf ogt, %83, %84 : vector<8x8xf32>
    %86 = arith.extui %85 : vector<8x8xi1> to vector<8x8xi32>
    %87 = arith.sitofp %86 : vector<8x8xi32> to vector<8x8xf32>
    %c8_i32_31 = arith.constant 8 : i32
    %88 = arith.muli %c5_i32, %c8_i32_31 : i32
    %89 = tpu.assume_multiple %88, 8 : i32
    %90 = arith.index_cast %89 : i32 to index
    %c0_32 = arith.constant 0 : index
    %91 = vector.load %arg7[%90, %c0_32] : memref<56x8xf32, #tpu.memory_space<vmem>>, vector<8x8xf32>
    tpu.vector_store %arg7[%90, %c0_32], %87 {strides = array<i32>} : memref<56x8xf32, #tpu.memory_space<vmem>>, vector<8x8xf32>,
    %cst_33 = arith.constant 1.000000e+00 : f32
    %92 = vector.broadcast %cst_33 : f32 to vector<8x8xf32>
    %93 = arith.subf %92, %87 : vector<8x8xf32>
    %94 = arith.mulf %83, %93 : vector<8x8xf32>
    %c6_i32 = arith.constant 6 : i32
    %95 = arith.subf %0, %94 : vector<8x8xf32>
    %cst_34 = arith.constant 1.000000e-01 : f32
    %96 = vector.broadcast %cst_34 : f32 to vector<8x8xf32>
    %97 = arith.mulf %96, %95 : vector<8x8xf32>
    %98 = arith.addf %94, %97 : vector<8x8xf32>
    %cst_35 = arith.constant 1.000000e+00 : f32
    %99 = vector.broadcast %cst_35 : f32 to vector<8x8xf32>
    %100 = arith.cmpf ogt, %98, %99 : vector<8x8xf32>
    %101 = arith.extui %100 : vector<8x8xi1> to vector<8x8xi32>
    %102 = arith.sitofp %101 : vector<8x8xi32> to vector<8x8xf32>
    %c8_i32_36 = arith.constant 8 : i32
    %103 = arith.muli %c6_i32, %c8_i32_36 : i32
    %104 = tpu.assume_multiple %103, 8 : i32
    %105 = arith.index_cast %104 : i32 to index
    %c0_37 = arith.constant 0 : index
    %106 = vector.load %arg7[%105, %c0_37] : memref<56x8xf32, #tpu.memory_space<vmem>>, vector<8x8xf32>
    tpu.vector_store %arg7[%105, %c0_37], %102 {strides = array<i32>} : memref<56x8xf32, #tpu.memory_space<vmem>>, vector<8x8xf32>,
    %cst_38 = arith.constant 1.000000e+00 : f32
    %107 = vector.broadcast %cst_38 : f32 to vector<8x8xf32>
    %108 = arith.subf %107, %102 : vector<8x8xf32>
    %109 = arith.mulf %98, %108 : vector<8x8xf32>
    %c7_i32 = arith.constant 7 : i32
    %c0_39 = arith.constant 0 : index
    %c0_40 = arith.constant 0 : index
    %110 = vector.load %arg7[%c0_39, %c0_40] : memref<56x8xf32, #tpu.memory_space<vmem>>, vector<56x8xf32>
    %111 = arith.truncf %110 : vector<56x8xf32> to vector<56x8xbf16>
    %c0_41 = arith.constant 0 : index
    %c0_42 = arith.constant 0 : index
    %112 = vector.load %arg2[%c0_41, %c0_42] : memref<8x128xbf16, #tpu.memory_space<vmem>>, vector<8x128xbf16>
    %cst_43 = arith.constant dense<0.000000e+00> : vector<56x128xf32>
    %113 = tpu.matmul %111, %112, %cst_43 {dimension_numbers = #tpu.dot_dimension_numbers<[1], [0], [0], [1], [0, 0, 1, 1], [], []>} : vector<56x8xbf16>, vector<8x128xbf16>, vector<56x128xf32> -> vector<56x128xf32>
    %c0_44 = arith.constant 0 : index
    %c0_45 = arith.constant 0 : index
    %114 = vector.load %arg8[%c0_44, %c0_45] : memref<56x128xf32, #tpu.memory_space<vmem>>, vector<56x128xf32>
    tpu.vector_store %arg8[%c0_44, %c0_45], %113 {strides = array<i32>} : memref<56x128xf32, #tpu.memory_space<vmem>>, vector<56x128xf32>,
    %c0_i32_46 = arith.constant 0 : i32
    %c8_i32_47 = arith.constant 8 : i32
    %115 = arith.muli %c0_i32_46, %c8_i32_47 : i32
    %116 = tpu.assume_multiple %115, 8 : i32
    %117 = arith.index_cast %116 : i32 to index
    %c0_48 = arith.constant 0 : index
    %118 = vector.load %arg8[%117, %c0_48] : memref<56x128xf32, #tpu.memory_space<vmem>>, vector<8x128xf32>
    %cst_49 = arith.constant 8.000000e-01 : f32
    %119 = vector.broadcast %cst_49 : f32 to vector<8x128xf32>
    %120 = arith.mulf %119, %2 : vector<8x128xf32>
    %121 = arith.truncf %2 : vector<8x128xf32> to vector<8x128xbf16>
    %c0_50 = arith.constant 0 : index
    %c0_51 = arith.constant 0 : index
    %122 = vector.load %arg3[%c0_50, %c0_51] : memref<128x128xbf16, #tpu.memory_space<vmem>>, vector<128x128xbf16>
    %cst_52 = arith.constant dense<0.000000e+00> : vector<8x128xf32>
    %123 = tpu.matmul %121, %122, %cst_52 {dimension_numbers = #tpu.dot_dimension_numbers<[1], [0], [0], [1], [0, 0, 1, 1], [], []>} : vector<8x128xbf16>, vector<128x128xbf16>, vector<8x128xf32> -> vector<8x128xf32>
    %124 = arith.addf %120, %123 : vector<8x128xf32>
    %125 = arith.addf %124, %118 : vector<8x128xf32>
    %cst_53 = arith.constant 6.000000e-01 : f32
    %126 = vector.broadcast %cst_53 : f32 to vector<8x128xf32>
    %127 = arith.mulf %2, %126 : vector<8x128xf32>
    %128 = arith.subf %125, %127 : vector<8x128xf32>
    %cst_54 = arith.constant 0.949999988 : f32
    %129 = vector.broadcast %cst_54 : f32 to vector<8x128xf32>
    %130 = arith.mulf %129, %2 : vector<8x128xf32>
    %131 = arith.addf %130, %2 : vector<8x128xf32>
    %cst_55 = arith.constant 1.000000e-01 : f32
    %132 = vector.broadcast %cst_55 : f32 to vector<8x128xf32>
    %133 = arith.mulf %132, %131 : vector<8x128xf32>
    %cst_56 = arith.constant 6.000000e-01 : f32
    %134 = vector.broadcast %cst_56 : f32 to vector<8x128xf32>
    %135 = arith.addf %134, %133 : vector<8x128xf32>
    %136 = arith.cmpf ogt, %128, %135 : vector<8x128xf32>
    %137 = arith.extui %136 : vector<8x128xi1> to vector<8x128xi32>
    %138 = arith.sitofp %137 : vector<8x128xi32> to vector<8x128xf32>
    %139 = arith.index_cast %116 : i32 to index
    %c0_57 = arith.constant 0 : index
    %140 = vector.load %arg9[%139, %c0_57] : memref<56x128xf32, #tpu.memory_space<vmem>>, vector<8x128xf32>
    tpu.vector_store %arg9[%139, %c0_57], %138 {strides = array<i32>} : memref<56x128xf32, #tpu.memory_space<vmem>>, vector<8x128xf32>,
    %c1_i32_58 = arith.constant 1 : i32
    %c8_i32_59 = arith.constant 8 : i32
    %141 = arith.muli %c1_i32_58, %c8_i32_59 : i32
    %142 = tpu.assume_multiple %141, 8 : i32
    %143 = arith.index_cast %142 : i32 to index
    %c0_60 = arith.constant 0 : index
    %144 = vector.load %arg8[%143, %c0_60] : memref<56x128xf32, #tpu.memory_space<vmem>>, vector<8x128xf32>
    %cst_61 = arith.constant 8.000000e-01 : f32
    %145 = vector.broadcast %cst_61 : f32 to vector<8x128xf32>
    %146 = arith.mulf %145, %128 : vector<8x128xf32>
    %147 = arith.truncf %138 : vector<8x128xf32> to vector<8x128xbf16>
    %c0_62 = arith.constant 0 : index
    %c0_63 = arith.constant 0 : index
    %148 = vector.load %arg3[%c0_62, %c0_63] : memref<128x128xbf16, #tpu.memory_space<vmem>>, vector<128x128xbf16>
    %cst_64 = arith.constant dense<0.000000e+00> : vector<8x128xf32>
    %149 = tpu.matmul %147, %148, %cst_64 {dimension_numbers = #tpu.dot_dimension_numbers<[1], [0], [0], [1], [0, 0, 1, 1], [], []>} : vector<8x128xbf16>, vector<128x128xbf16>, vector<8x128xf32> -> vector<8x128xf32>
    %150 = arith.addf %146, %149 : vector<8x128xf32>
    %151 = arith.addf %150, %144 : vector<8x128xf32>
    %cst_65 = arith.constant 6.000000e-01 : f32
    %152 = vector.broadcast %cst_65 : f32 to vector<8x128xf32>
    %153 = arith.mulf %138, %152 : vector<8x128xf32>
    %154 = arith.subf %151, %153 : vector<8x128xf32>
    %cst_66 = arith.constant 0.949999988 : f32
    %155 = vector.broadcast %cst_66 : f32 to vector<8x128xf32>
    %156 = arith.mulf %155, %131 : vector<8x128xf32>
    %157 = arith.addf %156, %138 : vector<8x128xf32>
    %cst_67 = arith.constant 1.000000e-01 : f32
    %158 = vector.broadcast %cst_67 : f32 to vector<8x128xf32>
    %159 = arith.mulf %158, %157 : vector<8x128xf32>
    %cst_68 = arith.constant 6.000000e-01 : f32
    %160 = vector.broadcast %cst_68 : f32 to vector<8x128xf32>
    %161 = arith.addf %160, %159 : vector<8x128xf32>
    %162 = arith.cmpf ogt, %154, %161 : vector<8x128xf32>
    %163 = arith.extui %162 : vector<8x128xi1> to vector<8x128xi32>
    %164 = arith.sitofp %163 : vector<8x128xi32> to vector<8x128xf32>
    %165 = arith.index_cast %142 : i32 to index
    %c0_69 = arith.constant 0 : index
    %166 = vector.load %arg9[%165, %c0_69] : memref<56x128xf32, #tpu.memory_space<vmem>>, vector<8x128xf32>
    tpu.vector_store %arg9[%165, %c0_69], %164 {strides = array<i32>} : memref<56x128xf32, #tpu.memory_space<vmem>>, vector<8x128xf32>,
    %c2_i32_70 = arith.constant 2 : i32
    %c8_i32_71 = arith.constant 8 : i32
    %167 = arith.muli %c2_i32_70, %c8_i32_71 : i32
    %168 = tpu.assume_multiple %167, 8 : i32
    %169 = arith.index_cast %168 : i32 to index
    %c0_72 = arith.constant 0 : index
    %170 = vector.load %arg8[%169, %c0_72] : memref<56x128xf32, #tpu.memory_space<vmem>>, vector<8x128xf32>
    %cst_73 = arith.constant 8.000000e-01 : f32
    %171 = vector.broadcast %cst_73 : f32 to vector<8x128xf32>
    %172 = arith.mulf %171, %154 : vector<8x128xf32>
    %173 = arith.truncf %164 : vector<8x128xf32> to vector<8x128xbf16>
    %c0_74 = arith.constant 0 : index
    %c0_75 = arith.constant 0 : index
    %174 = vector.load %arg3[%c0_74, %c0_75] : memref<128x128xbf16, #tpu.memory_space<vmem>>, vector<128x128xbf16>
    %cst_76 = arith.constant dense<0.000000e+00> : vector<8x128xf32>
    %175 = tpu.matmul %173, %174, %cst_76 {dimension_numbers = #tpu.dot_dimension_numbers<[1], [0], [0], [1], [0, 0, 1, 1], [], []>} : vector<8x128xbf16>, vector<128x128xbf16>, vector<8x128xf32> -> vector<8x128xf32>
    %176 = arith.addf %172, %175 : vector<8x128xf32>
    %177 = arith.addf %176, %170 : vector<8x128xf32>
    %cst_77 = arith.constant 6.000000e-01 : f32
    %178 = vector.broadcast %cst_77 : f32 to vector<8x128xf32>
    %179 = arith.mulf %164, %178 : vector<8x128xf32>
    %180 = arith.subf %177, %179 : vector<8x128xf32>
    %cst_78 = arith.constant 0.949999988 : f32
    %181 = vector.broadcast %cst_78 : f32 to vector<8x128xf32>
    %182 = arith.mulf %181, %157 : vector<8x128xf32>
    %183 = arith.addf %182, %164 : vector<8x128xf32>
    %cst_79 = arith.constant 1.000000e-01 : f32
    %184 = vector.broadcast %cst_79 : f32 to vector<8x128xf32>
    %185 = arith.mulf %184, %183 : vector<8x128xf32>
    %cst_80 = arith.constant 6.000000e-01 : f32
    %186 = vector.broadcast %cst_80 : f32 to vector<8x128xf32>
    %187 = arith.addf %186, %185 : vector<8x128xf32>
    %188 = arith.cmpf ogt, %180, %187 : vector<8x128xf32>
    %189 = arith.extui %188 : vector<8x128xi1> to vector<8x128xi32>
    %190 = arith.sitofp %189 : vector<8x128xi32> to vector<8x128xf32>
    %191 = arith.index_cast %168 : i32 to index
    %c0_81 = arith.constant 0 : index
    %192 = vector.load %arg9[%191, %c0_81] : memref<56x128xf32, #tpu.memory_space<vmem>>, vector<8x128xf32>
    tpu.vector_store %arg9[%191, %c0_81], %190 {strides = array<i32>} : memref<56x128xf32, #tpu.memory_space<vmem>>, vector<8x128xf32>,
    %c3_i32_82 = arith.constant 3 : i32
    %c8_i32_83 = arith.constant 8 : i32
    %193 = arith.muli %c3_i32_82, %c8_i32_83 : i32
    %194 = tpu.assume_multiple %193, 8 : i32
    %195 = arith.index_cast %194 : i32 to index
    %c0_84 = arith.constant 0 : index
    %196 = vector.load %arg8[%195, %c0_84] : memref<56x128xf32, #tpu.memory_space<vmem>>, vector<8x128xf32>
    %cst_85 = arith.constant 8.000000e-01 : f32
    %197 = vector.broadcast %cst_85 : f32 to vector<8x128xf32>
    %198 = arith.mulf %197, %180 : vector<8x128xf32>
    %199 = arith.truncf %190 : vector<8x128xf32> to vector<8x128xbf16>
    %c0_86 = arith.constant 0 : index
    %c0_87 = arith.constant 0 : index
    %200 = vector.load %arg3[%c0_86, %c0_87] : memref<128x128xbf16, #tpu.memory_space<vmem>>, vector<128x128xbf16>
    %cst_88 = arith.constant dense<0.000000e+00> : vector<8x128xf32>
    %201 = tpu.matmul %199, %200, %cst_88 {dimension_numbers = #tpu.dot_dimension_numbers<[1], [0], [0], [1], [0, 0, 1, 1], [], []>} : vector<8x128xbf16>, vector<128x128xbf16>, vector<8x128xf32> -> vector<8x128xf32>
    %202 = arith.addf %198, %201 : vector<8x128xf32>
    %203 = arith.addf %202, %196 : vector<8x128xf32>
    %cst_89 = arith.constant 6.000000e-01 : f32
    %204 = vector.broadcast %cst_89 : f32 to vector<8x128xf32>
    %205 = arith.mulf %190, %204 : vector<8x128xf32>
    %206 = arith.subf %203, %205 : vector<8x128xf32>
    %cst_90 = arith.constant 0.949999988 : f32
    %207 = vector.broadcast %cst_90 : f32 to vector<8x128xf32>
    %208 = arith.mulf %207, %183 : vector<8x128xf32>
    %209 = arith.addf %208, %190 : vector<8x128xf32>
    %cst_91 = arith.constant 1.000000e-01 : f32
    %210 = vector.broadcast %cst_91 : f32 to vector<8x128xf32>
    %211 = arith.mulf %210, %209 : vector<8x128xf32>
    %cst_92 = arith.constant 6.000000e-01 : f32
    %212 = vector.broadcast %cst_92 : f32 to vector<8x128xf32>
    %213 = arith.addf %212, %211 : vector<8x128xf32>
    %214 = arith.cmpf ogt, %206, %213 : vector<8x128xf32>
    %215 = arith.extui %214 : vector<8x128xi1> to vector<8x128xi32>
    %216 = arith.sitofp %215 : vector<8x128xi32> to vector<8x128xf32>
    %217 = arith.index_cast %194 : i32 to index
    %c0_93 = arith.constant 0 : index
    %218 = vector.load %arg9[%217, %c0_93] : memref<56x128xf32, #tpu.memory_space<vmem>>, vector<8x128xf32>
    tpu.vector_store %arg9[%217, %c0_93], %216 {strides = array<i32>} : memref<56x128xf32, #tpu.memory_space<vmem>>, vector<8x128xf32>,
    %c4_i32_94 = arith.constant 4 : i32
    %c8_i32_95 = arith.constant 8 : i32
    %219 = arith.muli %c4_i32_94, %c8_i32_95 : i32
    %220 = tpu.assume_multiple %219, 8 : i32
    %221 = arith.index_cast %220 : i32 to index
    %c0_96 = arith.constant 0 : index
    %222 = vector.load %arg8[%221, %c0_96] : memref<56x128xf32, #tpu.memory_space<vmem>>, vector<8x128xf32>
    %cst_97 = arith.constant 8.000000e-01 : f32
    %223 = vector.broadcast %cst_97 : f32 to vector<8x128xf32>
    %224 = arith.mulf %223, %206 : vector<8x128xf32>
    %225 = arith.truncf %216 : vector<8x128xf32> to vector<8x128xbf16>
    %c0_98 = arith.constant 0 : index
    %c0_99 = arith.constant 0 : index
    %226 = vector.load %arg3[%c0_98, %c0_99] : memref<128x128xbf16, #tpu.memory_space<vmem>>, vector<128x128xbf16>
    %cst_100 = arith.constant dense<0.000000e+00> : vector<8x128xf32>
    %227 = tpu.matmul %225, %226, %cst_100 {dimension_numbers = #tpu.dot_dimension_numbers<[1], [0], [0], [1], [0, 0, 1, 1], [], []>} : vector<8x128xbf16>, vector<128x128xbf16>, vector<8x128xf32> -> vector<8x128xf32>
    %228 = arith.addf %224, %227 : vector<8x128xf32>
    %229 = arith.addf %228, %222 : vector<8x128xf32>
    %cst_101 = arith.constant 6.000000e-01 : f32
    %230 = vector.broadcast %cst_101 : f32 to vector<8x128xf32>
    %231 = arith.mulf %216, %230 : vector<8x128xf32>
    %232 = arith.subf %229, %231 : vector<8x128xf32>
    %cst_102 = arith.constant 0.949999988 : f32
    %233 = vector.broadcast %cst_102 : f32 to vector<8x128xf32>
    %234 = arith.mulf %233, %209 : vector<8x128xf32>
    %235 = arith.addf %234, %216 : vector<8x128xf32>
    %cst_103 = arith.constant 1.000000e-01 : f32
    %236 = vector.broadcast %cst_103 : f32 to vector<8x128xf32>
    %237 = arith.mulf %236, %235 : vector<8x128xf32>
    %cst_104 = arith.constant 6.000000e-01 : f32
    %238 = vector.broadcast %cst_104 : f32 to vector<8x128xf32>
    %239 = arith.addf %238, %237 : vector<8x128xf32>
    %240 = arith.cmpf ogt, %232, %239 : vector<8x128xf32>
    %241 = arith.extui %240 : vector<8x128xi1> to vector<8x128xi32>
    %242 = arith.sitofp %241 : vector<8x128xi32> to vector<8x128xf32>
    %243 = arith.index_cast %220 : i32 to index
    %c0_105 = arith.constant 0 : index
    %244 = vector.load %arg9[%243, %c0_105] : memref<56x128xf32, #tpu.memory_space<vmem>>, vector<8x128xf32>
    tpu.vector_store %arg9[%243, %c0_105], %242 {strides = array<i32>} : memref<56x128xf32, #tpu.memory_space<vmem>>, vector<8x128xf32>,
    %c5_i32_106 = arith.constant 5 : i32
    %c8_i32_107 = arith.constant 8 : i32
    %245 = arith.muli %c5_i32_106, %c8_i32_107 : i32
    %246 = tpu.assume_multiple %245, 8 : i32
    %247 = arith.index_cast %246 : i32 to index
    %c0_108 = arith.constant 0 : index
    %248 = vector.load %arg8[%247, %c0_108] : memref<56x128xf32, #tpu.memory_space<vmem>>, vector<8x128xf32>
    %cst_109 = arith.constant 8.000000e-01 : f32
    %249 = vector.broadcast %cst_109 : f32 to vector<8x128xf32>
    %250 = arith.mulf %249, %232 : vector<8x128xf32>
    %251 = arith.truncf %242 : vector<8x128xf32> to vector<8x128xbf16>
    %c0_110 = arith.constant 0 : index
    %c0_111 = arith.constant 0 : index
    %252 = vector.load %arg3[%c0_110, %c0_111] : memref<128x128xbf16, #tpu.memory_space<vmem>>, vector<128x128xbf16>
    %cst_112 = arith.constant dense<0.000000e+00> : vector<8x128xf32>
    %253 = tpu.matmul %251, %252, %cst_112 {dimension_numbers = #tpu.dot_dimension_numbers<[1], [0], [0], [1], [0, 0, 1, 1], [], []>} : vector<8x128xbf16>, vector<128x128xbf16>, vector<8x128xf32> -> vector<8x128xf32>
    %254 = arith.addf %250, %253 : vector<8x128xf32>
    %255 = arith.addf %254, %248 : vector<8x128xf32>
    %cst_113 = arith.constant 6.000000e-01 : f32
    %256 = vector.broadcast %cst_113 : f32 to vector<8x128xf32>
    %257 = arith.mulf %242, %256 : vector<8x128xf32>
    %258 = arith.subf %255, %257 : vector<8x128xf32>
    %cst_114 = arith.constant 0.949999988 : f32
    %259 = vector.broadcast %cst_114 : f32 to vector<8x128xf32>
    %260 = arith.mulf %259, %235 : vector<8x128xf32>
    %261 = arith.addf %260, %242 : vector<8x128xf32>
    %cst_115 = arith.constant 1.000000e-01 : f32
    %262 = vector.broadcast %cst_115 : f32 to vector<8x128xf32>
    %263 = arith.mulf %262, %261 : vector<8x128xf32>
    %cst_116 = arith.constant 6.000000e-01 : f32
    %264 = vector.broadcast %cst_116 : f32 to vector<8x128xf32>
    %265 = arith.addf %264, %263 : vector<8x128xf32>
    %266 = arith.cmpf ogt, %258, %265 : vector<8x128xf32>
    %267 = arith.extui %266 : vector<8x128xi1> to vector<8x128xi32>
    %268 = arith.sitofp %267 : vector<8x128xi32> to vector<8x128xf32>
    %269 = arith.index_cast %246 : i32 to index
    %c0_117 = arith.constant 0 : index
    %270 = vector.load %arg9[%269, %c0_117] : memref<56x128xf32, #tpu.memory_space<vmem>>, vector<8x128xf32>
    tpu.vector_store %arg9[%269, %c0_117], %268 {strides = array<i32>} : memref<56x128xf32, #tpu.memory_space<vmem>>, vector<8x128xf32>,
    %c6_i32_118 = arith.constant 6 : i32
    %c8_i32_119 = arith.constant 8 : i32
    %271 = arith.muli %c6_i32_118, %c8_i32_119 : i32
    %272 = tpu.assume_multiple %271, 8 : i32
    %273 = arith.index_cast %272 : i32 to index
    %c0_120 = arith.constant 0 : index
    %274 = vector.load %arg8[%273, %c0_120] : memref<56x128xf32, #tpu.memory_space<vmem>>, vector<8x128xf32>
    %cst_121 = arith.constant 8.000000e-01 : f32
    %275 = vector.broadcast %cst_121 : f32 to vector<8x128xf32>
    %276 = arith.mulf %275, %258 : vector<8x128xf32>
    %277 = arith.truncf %268 : vector<8x128xf32> to vector<8x128xbf16>
    %c0_122 = arith.constant 0 : index
    %c0_123 = arith.constant 0 : index
    %278 = vector.load %arg3[%c0_122, %c0_123] : memref<128x128xbf16, #tpu.memory_space<vmem>>, vector<128x128xbf16>
    %cst_124 = arith.constant dense<0.000000e+00> : vector<8x128xf32>
    %279 = tpu.matmul %277, %278, %cst_124 {dimension_numbers = #tpu.dot_dimension_numbers<[1], [0], [0], [1], [0, 0, 1, 1], [], []>} : vector<8x128xbf16>, vector<128x128xbf16>, vector<8x128xf32> -> vector<8x128xf32>
    %280 = arith.addf %276, %279 : vector<8x128xf32>
    %281 = arith.addf %280, %274 : vector<8x128xf32>
    %cst_125 = arith.constant 6.000000e-01 : f32
    %282 = vector.broadcast %cst_125 : f32 to vector<8x128xf32>
    %283 = arith.mulf %268, %282 : vector<8x128xf32>
    %284 = arith.subf %281, %283 : vector<8x128xf32>
    %cst_126 = arith.constant 0.949999988 : f32
    %285 = vector.broadcast %cst_126 : f32 to vector<8x128xf32>
    %286 = arith.mulf %285, %261 : vector<8x128xf32>
    %287 = arith.addf %286, %268 : vector<8x128xf32>
    %cst_127 = arith.constant 1.000000e-01 : f32
    %288 = vector.broadcast %cst_127 : f32 to vector<8x128xf32>
    %289 = arith.mulf %288, %287 : vector<8x128xf32>
    %cst_128 = arith.constant 6.000000e-01 : f32
    %290 = vector.broadcast %cst_128 : f32 to vector<8x128xf32>
    %291 = arith.addf %290, %289 : vector<8x128xf32>
    %292 = arith.cmpf ogt, %284, %291 : vector<8x128xf32>
    %293 = arith.extui %292 : vector<8x128xi1> to vector<8x128xi32>
    %294 = arith.sitofp %293 : vector<8x128xi32> to vector<8x128xf32>
    %295 = arith.index_cast %272 : i32 to index
    %c0_129 = arith.constant 0 : index
    %296 = vector.load %arg9[%295, %c0_129] : memref<56x128xf32, #tpu.memory_space<vmem>>, vector<8x128xf32>
    tpu.vector_store %arg9[%295, %c0_129], %294 {strides = array<i32>} : memref<56x128xf32, #tpu.memory_space<vmem>>, vector<8x128xf32>,
    %c7_i32_130 = arith.constant 7 : i32
    %c0_131 = arith.constant 0 : index
    %c0_132 = arith.constant 0 : index
    %297 = vector.load %arg9[%c0_131, %c0_132] : memref<56x128xf32, #tpu.memory_space<vmem>>, vector<56x128xf32>
    %298 = arith.truncf %297 : vector<56x128xf32> to vector<56x128xbf16>
    %c0_133 = arith.constant 0 : index
    %c0_134 = arith.constant 0 : index
    %299 = vector.load %arg4[%c0_133, %c0_134] : memref<128x256xbf16, #tpu.memory_space<vmem>>, vector<128x256xbf16>
    %cst_135 = arith.constant dense<0.000000e+00> : vector<56x256xf32>
    %300 = tpu.matmul %298, %299, %cst_135 {dimension_numbers = #tpu.dot_dimension_numbers<[1], [0], [0], [1], [0, 0, 1, 1], [], []>} : vector<56x128xbf16>, vector<128x256xbf16>, vector<56x256xf32> -> vector<56x256xf32>
    %c0_136 = arith.constant 0 : index
    %c0_137 = arith.constant 0 : index
    %301 = vector.load %arg10[%c0_136, %c0_137] : memref<56x256xf32, #tpu.memory_space<vmem>>, vector<56x256xf32>
    tpu.vector_store %arg10[%c0_136, %c0_137], %300 {strides = array<i32>} : memref<56x256xf32, #tpu.memory_space<vmem>>, vector<56x256xf32>,
    %c0_i32_138 = arith.constant 0 : i32
    %c8_i32_139 = arith.constant 8 : i32
    %302 = arith.muli %c0_i32_138, %c8_i32_139 : i32
    %303 = tpu.assume_multiple %302, 8 : i32
    %304 = arith.index_cast %303 : i32 to index
    %c0_140 = arith.constant 0 : index
    %305 = vector.load %arg10[%304, %c0_140] : memref<56x256xf32, #tpu.memory_space<vmem>>, vector<8x128xf32>
    %306 = arith.index_cast %303 : i32 to index
    %c128 = arith.constant 128 : index
    %307 = vector.load %arg10[%306, %c128] : memref<56x256xf32, #tpu.memory_space<vmem>>, vector<8x128xf32>
    %cst_141 = arith.constant 8.000000e-01 : f32
    %308 = vector.broadcast %cst_141 : f32 to vector<8x128xf32>
    %309 = arith.mulf %308, %3 : vector<8x128xf32>
    %310 = arith.addf %309, %305 : vector<8x128xf32>
    %311 = arith.addf %4, %307 : vector<8x128xf32>
    %312 = arith.subf %311, %4 : vector<8x128xf32>
    %cst_142 = arith.constant 1.000000e-01 : f32
    %313 = vector.broadcast %cst_142 : f32 to vector<8x128xf32>
    %314 = arith.mulf %313, %312 : vector<8x128xf32>
    %315 = arith.addf %4, %314 : vector<8x128xf32>
    %cst_143 = arith.constant 2.000000e-01 : f32
    %316 = vector.broadcast %cst_143 : f32 to vector<8x128xf32>
    %317 = arith.mulf %316, %311 : vector<8x128xf32>
    %318 = arith.subf %311, %317 : vector<8x128xf32>
    %c7_i32_144 = arith.constant 7 : i32
    %319 = arith.muli %c0_i32, %c7_i32_144 : i32
    %320 = arith.addi %319, %c0_i32_138 : i32
    %c7_i32_145 = arith.constant 7 : i32
    %321 = arith.cmpi slt, %320, %c7_i32_145 : i32
    %322 = arith.maximumf %3, %310 : vector<8x128xf32>
    %323 = arith.select %321, %322, %3 : vector<8x128xf32>
    %324 = arith.maximumf %4, %315 : vector<8x128xf32>
    %325 = arith.select %321, %324, %4 : vector<8x128xf32>
    %c1_i32_146 = arith.constant 1 : i32
    %c8_i32_147 = arith.constant 8 : i32
    %326 = arith.muli %c1_i32_146, %c8_i32_147 : i32
    %327 = tpu.assume_multiple %326, 8 : i32
    %328 = arith.index_cast %327 : i32 to index
    %c0_148 = arith.constant 0 : index
    %329 = vector.load %arg10[%328, %c0_148] : memref<56x256xf32, #tpu.memory_space<vmem>>, vector<8x128xf32>
    %330 = arith.index_cast %327 : i32 to index
    %c128_149 = arith.constant 128 : index
    %331 = vector.load %arg10[%330, %c128_149] : memref<56x256xf32, #tpu.memory_space<vmem>>, vector<8x128xf32>
    %cst_150 = arith.constant 8.000000e-01 : f32
    %332 = vector.broadcast %cst_150 : f32 to vector<8x128xf32>
    %333 = arith.mulf %332, %310 : vector<8x128xf32>
    %334 = arith.addf %333, %329 : vector<8x128xf32>
    %335 = arith.addf %318, %331 : vector<8x128xf32>
    %336 = arith.subf %335, %315 : vector<8x128xf32>
    %cst_151 = arith.constant 1.000000e-01 : f32
    %337 = vector.broadcast %cst_151 : f32 to vector<8x128xf32>
    %338 = arith.mulf %337, %336 : vector<8x128xf32>
    %339 = arith.addf %315, %338 : vector<8x128xf32>
    %cst_152 = arith.constant 2.000000e-01 : f32
    %340 = vector.broadcast %cst_152 : f32 to vector<8x128xf32>
    %341 = arith.mulf %340, %335 : vector<8x128xf32>
    %342 = arith.subf %335, %341 : vector<8x128xf32>
    %c7_i32_153 = arith.constant 7 : i32
    %343 = arith.muli %c0_i32, %c7_i32_153 : i32
    %344 = arith.addi %343, %c1_i32_146 : i32
    %c7_i32_154 = arith.constant 7 : i32
    %345 = arith.cmpi slt, %344, %c7_i32_154 : i32
    %346 = arith.maximumf %323, %334 : vector<8x128xf32>
    %347 = arith.select %345, %346, %323 : vector<8x128xf32>
    %348 = arith.maximumf %325, %339 : vector<8x128xf32>
    %349 = arith.select %345, %348, %325 : vector<8x128xf32>
    %c2_i32_155 = arith.constant 2 : i32
    %c8_i32_156 = arith.constant 8 : i32
    %350 = arith.muli %c2_i32_155, %c8_i32_156 : i32
    %351 = tpu.assume_multiple %350, 8 : i32
    %352 = arith.index_cast %351 : i32 to index
    %c0_157 = arith.constant 0 : index
    %353 = vector.load %arg10[%352, %c0_157] : memref<56x256xf32, #tpu.memory_space<vmem>>, vector<8x128xf32>
    %354 = arith.index_cast %351 : i32 to index
    %c128_158 = arith.constant 128 : index
    %355 = vector.load %arg10[%354, %c128_158] : memref<56x256xf32, #tpu.memory_space<vmem>>, vector<8x128xf32>
    %cst_159 = arith.constant 8.000000e-01 : f32
    %356 = vector.broadcast %cst_159 : f32 to vector<8x128xf32>
    %357 = arith.mulf %356, %334 : vector<8x128xf32>
    %358 = arith.addf %357, %353 : vector<8x128xf32>
    %359 = arith.addf %342, %355 : vector<8x128xf32>
    %360 = arith.subf %359, %339 : vector<8x128xf32>
    %cst_160 = arith.constant 1.000000e-01 : f32
    %361 = vector.broadcast %cst_160 : f32 to vector<8x128xf32>
    %362 = arith.mulf %361, %360 : vector<8x128xf32>
    %363 = arith.addf %339, %362 : vector<8x128xf32>
    %cst_161 = arith.constant 2.000000e-01 : f32
    %364 = vector.broadcast %cst_161 : f32 to vector<8x128xf32>
    %365 = arith.mulf %364, %359 : vector<8x128xf32>
    %366 = arith.subf %359, %365 : vector<8x128xf32>
    %c7_i32_162 = arith.constant 7 : i32
    %367 = arith.muli %c0_i32, %c7_i32_162 : i32
    %368 = arith.addi %367, %c2_i32_155 : i32
    %c7_i32_163 = arith.constant 7 : i32
    %369 = arith.cmpi slt, %368, %c7_i32_163 : i32
    %370 = arith.maximumf %347, %358 : vector<8x128xf32>
    %371 = arith.select %369, %370, %347 : vector<8x128xf32>
    %372 = arith.maximumf %349, %363 : vector<8x128xf32>
    %373 = arith.select %369, %372, %349 : vector<8x128xf32>
    %c3_i32_164 = arith.constant 3 : i32
    %c8_i32_165 = arith.constant 8 : i32
    %374 = arith.muli %c3_i32_164, %c8_i32_165 : i32
    %375 = tpu.assume_multiple %374, 8 : i32
    %376 = arith.index_cast %375 : i32 to index
    %c0_166 = arith.constant 0 : index
    %377 = vector.load %arg10[%376, %c0_166] : memref<56x256xf32, #tpu.memory_space<vmem>>, vector<8x128xf32>
    %378 = arith.index_cast %375 : i32 to index
    %c128_167 = arith.constant 128 : index
    %379 = vector.load %arg10[%378, %c128_167] : memref<56x256xf32, #tpu.memory_space<vmem>>, vector<8x128xf32>
    %cst_168 = arith.constant 8.000000e-01 : f32
    %380 = vector.broadcast %cst_168 : f32 to vector<8x128xf32>
    %381 = arith.mulf %380, %358 : vector<8x128xf32>
    %382 = arith.addf %381, %377 : vector<8x128xf32>
    %383 = arith.addf %366, %379 : vector<8x128xf32>
    %384 = arith.subf %383, %363 : vector<8x128xf32>
    %cst_169 = arith.constant 1.000000e-01 : f32
    %385 = vector.broadcast %cst_169 : f32 to vector<8x128xf32>
    %386 = arith.mulf %385, %384 : vector<8x128xf32>
    %387 = arith.addf %363, %386 : vector<8x128xf32>
    %cst_170 = arith.constant 2.000000e-01 : f32
    %388 = vector.broadcast %cst_170 : f32 to vector<8x128xf32>
    %389 = arith.mulf %388, %383 : vector<8x128xf32>
    %390 = arith.subf %383, %389 : vector<8x128xf32>
    %c7_i32_171 = arith.constant 7 : i32
    %391 = arith.muli %c0_i32, %c7_i32_171 : i32
    %392 = arith.addi %391, %c3_i32_164 : i32
    %c7_i32_172 = arith.constant 7 : i32
    %393 = arith.cmpi slt, %392, %c7_i32_172 : i32
    %394 = arith.maximumf %371, %382 : vector<8x128xf32>
    %395 = arith.select %393, %394, %371 : vector<8x128xf32>
    %396 = arith.maximumf %373, %387 : vector<8x128xf32>
    %397 = arith.select %393, %396, %373 : vector<8x128xf32>
    %c4_i32_173 = arith.constant 4 : i32
    %c8_i32_174 = arith.constant 8 : i32
    %398 = arith.muli %c4_i32_173, %c8_i32_174 : i32
    %399 = tpu.assume_multiple %398, 8 : i32
    %400 = arith.index_cast %399 : i32 to index
    %c0_175 = arith.constant 0 : index
    %401 = vector.load %arg10[%400, %c0_175] : memref<56x256xf32, #tpu.memory_space<vmem>>, vector<8x128xf32>
    %402 = arith.index_cast %399 : i32 to index
    %c128_176 = arith.constant 128 : index
    %403 = vector.load %arg10[%402, %c128_176] : memref<56x256xf32, #tpu.memory_space<vmem>>, vector<8x128xf32>
    %cst_177 = arith.constant 8.000000e-01 : f32
    %404 = vector.broadcast %cst_177 : f32 to vector<8x128xf32>
    %405 = arith.mulf %404, %382 : vector<8x128xf32>
    %406 = arith.addf %405, %401 : vector<8x128xf32>
    %407 = arith.addf %390, %403 : vector<8x128xf32>
    %408 = arith.subf %407, %387 : vector<8x128xf32>
    %cst_178 = arith.constant 1.000000e-01 : f32
    %409 = vector.broadcast %cst_178 : f32 to vector<8x128xf32>
    %410 = arith.mulf %409, %408 : vector<8x128xf32>
    %411 = arith.addf %387, %410 : vector<8x128xf32>
    %cst_179 = arith.constant 2.000000e-01 : f32
    %412 = vector.broadcast %cst_179 : f32 to vector<8x128xf32>
    %413 = arith.mulf %412, %407 : vector<8x128xf32>
    %414 = arith.subf %407, %413 : vector<8x128xf32>
    %c7_i32_180 = arith.constant 7 : i32
    %415 = arith.muli %c0_i32, %c7_i32_180 : i32
    %416 = arith.addi %415, %c4_i32_173 : i32
    %c7_i32_181 = arith.constant 7 : i32
    %417 = arith.cmpi slt, %416, %c7_i32_181 : i32
    %418 = arith.maximumf %395, %406 : vector<8x128xf32>
    %419 = arith.select %417, %418, %395 : vector<8x128xf32>
    %420 = arith.maximumf %397, %411 : vector<8x128xf32>
    %421 = arith.select %417, %420, %397 : vector<8x128xf32>
    %c5_i32_182 = arith.constant 5 : i32
    %c8_i32_183 = arith.constant 8 : i32
    %422 = arith.muli %c5_i32_182, %c8_i32_183 : i32
    %423 = tpu.assume_multiple %422, 8 : i32
    %424 = arith.index_cast %423 : i32 to index
    %c0_184 = arith.constant 0 : index
    %425 = vector.load %arg10[%424, %c0_184] : memref<56x256xf32, #tpu.memory_space<vmem>>, vector<8x128xf32>
    %426 = arith.index_cast %423 : i32 to index
    %c128_185 = arith.constant 128 : index
    %427 = vector.load %arg10[%426, %c128_185] : memref<56x256xf32, #tpu.memory_space<vmem>>, vector<8x128xf32>
    %cst_186 = arith.constant 8.000000e-01 : f32
    %428 = vector.broadcast %cst_186 : f32 to vector<8x128xf32>
    %429 = arith.mulf %428, %406 : vector<8x128xf32>
    %430 = arith.addf %429, %425 : vector<8x128xf32>
    %431 = arith.addf %414, %427 : vector<8x128xf32>
    %432 = arith.subf %431, %411 : vector<8x128xf32>
    %cst_187 = arith.constant 1.000000e-01 : f32
    %433 = vector.broadcast %cst_187 : f32 to vector<8x128xf32>
    %434 = arith.mulf %433, %432 : vector<8x128xf32>
    %435 = arith.addf %411, %434 : vector<8x128xf32>
    %cst_188 = arith.constant 2.000000e-01 : f32
    %436 = vector.broadcast %cst_188 : f32 to vector<8x128xf32>
    %437 = arith.mulf %436, %431 : vector<8x128xf32>
    %438 = arith.subf %431, %437 : vector<8x128xf32>
    %c7_i32_189 = arith.constant 7 : i32
    %439 = arith.muli %c0_i32, %c7_i32_189 : i32
    %440 = arith.addi %439, %c5_i32_182 : i32
    %c7_i32_190 = arith.constant 7 : i32
    %441 = arith.cmpi slt, %440, %c7_i32_190 : i32
    %442 = arith.maximumf %419, %430 : vector<8x128xf32>
    %443 = arith.select %441, %442, %419 : vector<8x128xf32>
    %444 = arith.maximumf %421, %435 : vector<8x128xf32>
    %445 = arith.select %441, %444, %421 : vector<8x128xf32>
    %c6_i32_191 = arith.constant 6 : i32
    %c8_i32_192 = arith.constant 8 : i32
    %446 = arith.muli %c6_i32_191, %c8_i32_192 : i32
    %447 = tpu.assume_multiple %446, 8 : i32
    %448 = arith.index_cast %447 : i32 to index
    %c0_193 = arith.constant 0 : index
    %449 = vector.load %arg10[%448, %c0_193] : memref<56x256xf32, #tpu.memory_space<vmem>>, vector<8x128xf32>
    %450 = arith.index_cast %447 : i32 to index
    %c128_194 = arith.constant 128 : index
    %451 = vector.load %arg10[%450, %c128_194] : memref<56x256xf32, #tpu.memory_space<vmem>>, vector<8x128xf32>
    %cst_195 = arith.constant 8.000000e-01 : f32
    %452 = vector.broadcast %cst_195 : f32 to vector<8x128xf32>
    %453 = arith.mulf %452, %430 : vector<8x128xf32>
    %454 = arith.addf %453, %449 : vector<8x128xf32>
    %455 = arith.addf %438, %451 : vector<8x128xf32>
    %456 = arith.subf %455, %435 : vector<8x128xf32>
    %cst_196 = arith.constant 1.000000e-01 : f32
    %457 = vector.broadcast %cst_196 : f32 to vector<8x128xf32>
    %458 = arith.mulf %457, %456 : vector<8x128xf32>
    %459 = arith.addf %435, %458 : vector<8x128xf32>
    %cst_197 = arith.constant 2.000000e-01 : f32
    %460 = vector.broadcast %cst_197 : f32 to vector<8x128xf32>
    %461 = arith.mulf %460, %455 : vector<8x128xf32>
    %462 = arith.subf %455, %461 : vector<8x128xf32>
    %c7_i32_198 = arith.constant 7 : i32
    %463 = arith.muli %c0_i32, %c7_i32_198 : i32
    %464 = arith.addi %463, %c6_i32_191 : i32
    %c7_i32_199 = arith.constant 7 : i32
    %465 = arith.cmpi slt, %464, %c7_i32_199 : i32
    %466 = arith.maximumf %443, %454 : vector<8x128xf32>
    %467 = arith.select %465, %466, %443 : vector<8x128xf32>
    %468 = arith.maximumf %445, %459 : vector<8x128xf32>
    %469 = arith.select %465, %468, %445 : vector<8x128xf32>
    %c7_i32_200 = arith.constant 7 : i32
    %c1_i32_201 = arith.constant 1 : i32
    %470 = vector.extract_strided_slice %467 {offsets = [0, 0], sizes = [8, 4], strides = [1, 1]} : vector<8x128xf32> to vector<8x4xf32>
    %cst_202 = arith.constant dense<0xFF800000> : vector<8xf32>
    %471 = vector.multi_reduction <maximumf>, %470, %cst_202 [1] : vector<8x4xf32> to vector<8xf32>
    %472 = vector.shape_cast %471 : vector<8xf32> to vector<8x1xf32>
    %473 = vector.broadcast %472 : vector<8x1xf32> to vector<8x4xf32>
    %474 = arith.subf %470, %473 : vector<8x4xf32>
    %475 = math.exp %474 : vector<8x4xf32>
    %cst_203 = arith.constant dense<0.000000e+00> : vector<8xf32>
    %476 = vector.multi_reduction <add>, %475, %cst_203 [1] : vector<8x4xf32> to vector<8xf32>
    %477 = vector.shape_cast %476 : vector<8xf32> to vector<8x1xf32>
    %478 = vector.broadcast %477 : vector<8x1xf32> to vector<8x4xf32>
    %479 = arith.divf %475, %478 : vector<8x4xf32>
    %c0_204 = arith.constant 0 : index
    %c0_205 = arith.constant 0 : index
    %480 = vector.load %arg5[%c0_204, %c0_205] : memref<8x4xf32, #tpu.memory_space<vmem>>, vector<8x4xf32>
    tpu.vector_store %arg5[%c0_204, %c0_205], %479 {strides = array<i32>} : memref<8x4xf32, #tpu.memory_space<vmem>>, vector<8x4xf32>,
    %481 = vector.extract_strided_slice %469 {offsets = [0, 0], sizes = [8, 1], strides = [1, 1]} : vector<8x128xf32> to vector<8x1xf32>
    %c0_206 = arith.constant 0 : index
    %c0_207 = arith.constant 0 : index
    %482 = vector.load %arg6[%c0_206, %c0_207] : memref<8x1xf32, #tpu.memory_space<vmem>>, vector<8x1xf32>
    tpu.vector_store %arg6[%c0_206, %c0_207], %481 {strides = array<i32>} : memref<8x1xf32, #tpu.memory_space<vmem>>, vector<8x1xf32>,
    return
  }
  func.func @transform_0(%arg0: i32) -> (i32, i32) {
    %c0_i32 = arith.constant 0 : i32
    %c0_i32_0 = arith.constant 0 : i32
    return %arg0, %c0_i32 : i32, i32
  }
  func.func @transform_1(%arg0: i32) -> (i32, i32) {
    %c0_i32 = arith.constant 0 : i32
    %c0_i32_0 = arith.constant 0 : i32
    %c0_i32_1 = arith.constant 0 : i32
    return %c0_i32, %c0_i32_0 : i32, i32
  }
  func.func @transform_2(%arg0: i32) -> (i32, i32) {
    %c0_i32 = arith.constant 0 : i32
    %c0_i32_0 = arith.constant 0 : i32
    %c0_i32_1 = arith.constant 0 : i32
    return %c0_i32, %c0_i32_0 : i32, i32
  }
  func.func @transform_3(%arg0: i32) -> (i32, i32) {
    %c0_i32 = arith.constant 0 : i32
    %c0_i32_0 = arith.constant 0 : i32
    %c0_i32_1 = arith.constant 0 : i32
    return %c0_i32, %c0_i32_0 : i32, i32
  }
  func.func @transform_4(%arg0: i32) -> (i32, i32) {
    %c0_i32 = arith.constant 0 : i32
    %c0_i32_0 = arith.constant 0 : i32
    return %arg0, %c0_i32 : i32, i32
  }
  func.func @transform_5(%arg0: i32) -> (i32, i32) {
    %c0_i32 = arith.constant 0 : i32
    %c0_i32_0 = arith.constant 0 : i32
    return %arg0, %c0_i32 : i32, i32
  }
}

</mosaic_0001>

<bundles_post_ra>
// kernel: tpu_custom_call.1
= control target key start
LH: loop header
LB: loop body
LE: loop exit
PB: predicated region body
PF: predicated region fallthrough
CT: control target
= control target key end

     0   :  { %11 = vsyncpa [#allocation7], 0  ;;  %s2235_s0 = inlined_call_operand.hbm [shape: f32[8,8], index: 0, kind: input, shape index: {}]   ;;  %s2236_s1 = inlined_call_operand.hbm [shape: bf16[8,128], index: 1, kind: input, shape index: {}]   ;;  %s2237_s2 = inlined_call_operand.hbm [shape: bf16[128,128], index: 2, kind: input, shape index: {}]   ;;  %s2238_s3 = inlined_call_operand.hbm [shape: bf16[128,256], index: 3, kind: input, shape index: {}]   ;;  %s2239_s4 = inlined_call_operand.vmem [shape: f32[8,4], index: 4, kind: output, shape index: {0}]   ;;  %s2240_s5 = inlined_call_operand.vmem [shape: f32[8,1], index: 5, kind: output, shape index: {1}]  }
   0x1   :  { %12 = vsyncpa [#allocation9], 0 }
   0x2   :  { %13 = vsyncpa [#allocation12], 0  ;;  %s1916_s18 = smov [#allocation8]   ;;  %s1917_s20 = smov [#allocation6]  }
   0x3   :  { %s30_s19 = sshll.u32 %s1916_s18, 4  ;;  %s20_s21 = sshll.u32 %s1917_s20, 4  ;;  %s31_s19 = int_to_ptr.vmem [resolvable:$true] %s30_s19  ;;  %s21_s21 = int_to_ptr.vmem [resolvable:$true] %s20_s21 }
   0x4   :  { %s1822_s24 = scalar_lea.hbm %s2236_s1, 64 }
   0x5   :  { %p1823_p0 = scmp.ne.s32.totalorder %s2236_s1, %s1822_s24  ;;  %p1826_p1 = scmp.lt.u32.totalorder %s1822_s24, %s2236_s1 }
   0x7   :  { %p1828_p2 = pnand %p1826_p1, %p1823_p0 }
   0x9   :  { %1831 = shalt.err (!%p1828_p2)
}
   0xa   :  { %s1832_s29 = scalar_lea.vmem %s31_s19, 64  ;;  %p1837_p4 = scmp.lt.s32.totalorder %s31_s19, %s31_s19 }
   0xb   :  { %p1833_p3 = scmp.ne.s32.totalorder %s31_s19, %s1832_s29  ;;  %p1838_p5 = scmp.lt.s32.totalorder %s1832_s29, %s1832_s29 }
   0xd   :  { %p1839_p6 = por %p1838_p5, %p1837_p4 }
   0xf   :  { %p1840_p7 = pnand %p1839_p6, %p1833_p3 }
  0x11   :  { %1843 = shalt.err (!%p1840_p7)
}
  0x12   :  { %33 = dma.hbm_to_vmem [thread:$0]  %s2236_s1, 64, %s31_s19, [#allocation9]  }
  0x13   :  { %s1844_s9 = scalar_lea.hbm %s2235_s0, 128 }
  0x14   :  { %p1845_p8 = scmp.ne.s32.totalorder %s2235_s0, %s1844_s9  ;;  %p1848_p9 = scmp.lt.u32.totalorder %s1844_s9, %s2235_s0 }
  0x16   :  { %p1850_p10 = pnand %p1848_p9, %p1845_p8 }
  0x18   :  { %1853 = shalt.err (!%p1850_p10)
}
  0x19   :  { %s1854_s14 = scalar_lea.vmem %s21_s21, 128  ;;  %p1859_p12 = scmp.lt.s32.totalorder %s21_s21, %s21_s21 }
  0x1a   :  { %p1855_p11 = scmp.ne.s32.totalorder %s21_s21, %s1854_s14  ;;  %p1860_p13 = scmp.lt.s32.totalorder %s1854_s14, %s1854_s14 }
  0x1c   :  { %p1861_p0 = por %p1860_p13, %p1859_p12 }
  0x1e   :  { %p1862_p1 = pnand %p1861_p0, %p1855_p11 }
  0x20   :  { %1865 = shalt.err (!%p1862_p1)
}
  0x21   :  { %23 = dma.hbm_to_vmem [thread:$0]  %s2235_s0, 128, %s21_s21, [#allocation7]  }
  0x22   :  { %s1918_s16 = smov [#allocation10]   ;;  %s1866_s20 = scalar_lea.hbm %s2237_s2, 1024 }
  0x23   :  { %s39_s17 = sshll.u32 %s1918_s16, 4  ;;  %p1867_p2 = scmp.ne.s32.totalorder %s2237_s2, %s1866_s20  ;;  %s40_s17 = int_to_ptr.vmem [resolvable:$true] %s39_s17 }
  0x24   :  { %p1870_p3 = scmp.lt.u32.totalorder %s1866_s20, %s2237_s2 }
  0x26   :  { %p1872_p4 = pnand %p1870_p3, %p1867_p2 }
  0x28   :  { %1875 = shalt.err (!%p1872_p4)
}
  0x29   :  { %s1876_s26 = scalar_lea.vmem %s40_s17, 1024  ;;  %p1881_p6 = scmp.lt.s32.totalorder %s40_s17, %s40_s17 }
  0x2a   :  { %p1877_p5 = scmp.ne.s32.totalorder %s40_s17, %s1876_s26  ;;  %p1882_p7 = scmp.lt.s32.totalorder %s1876_s26, %s1876_s26 }
  0x2c   :  { %p1883_p8 = por %p1882_p7, %p1881_p6 }
  0x2e   :  { %p1884_p9 = pnand %p1883_p8, %p1877_p5 }
  0x30   :  { %1887 = shalt.err (!%p1884_p9)
}
  0x31   :  { %s1919_s0 = smov 64   ;;  %s1920_s21 = smov 4  }
  0x32   :  { %45 = dma.hbm_to_vmem [thread:$0]  %s2237_s2, 1024, %s40_s17, [#allocation9], %s1919_s0, %s1919_s0, %s1920_s21  }
  0x33   :  { %s1921_s29 = smov [#allocation11]   ;;  %s1888_s8 = scalar_lea.hbm %s2238_s3, 2048 }
  0x34   :  { %s51_s30 = sshll.u32 %s1921_s29, 4  ;;  %p1889_p10 = scmp.ne.s32.totalorder %s2238_s3, %s1888_s8  ;;  %s52_s30 = int_to_ptr.vmem [resolvable:$true] %s51_s30 }
  0x35   :  { %p1892_p11 = scmp.lt.u32.totalorder %s1888_s8, %s2238_s3 }
  0x37   :  { %p1894_p12 = pnand %p1892_p11, %p1889_p10 }
  0x39   :  { %1897 = shalt.err (!%p1894_p12)
}
  0x3a   :  { %s1898_s13 = scalar_lea.vmem %s52_s30, 2048  ;;  %p1903_p0 = scmp.lt.s32.totalorder %s52_s30, %s52_s30 }
  0x3b   :  { %p1899_p13 = scmp.ne.s32.totalorder %s52_s30, %s1898_s13  ;;  %p1904_p1 = scmp.lt.s32.totalorder %s1898_s13, %s1898_s13 }
  0x3d   :  { %p1905_p2 = por %p1904_p1, %p1903_p0 }
  0x3f   :  { %p1906_p3 = pnand %p1905_p2, %p1899_p13 }
  0x41   :  { %1909 = shalt.err (!%p1906_p3)
}
  0x42   :  { %s1922_s2 = smov 128   ;;  %s1923_s14 = smov 8  }
  0x43   :  { %57 = dma.hbm_to_vmem [thread:$0]  %s2238_s3, 2048, %s52_s30, [#allocation12], %s1922_s2, %s1922_s2, %s1923_s14  }
  0x44   :  { %1910 = dma.done.wait [#allocation7], 128  }
  0x45   :  { %1911 = vsyncadd [#allocation7], 4294967168 }
  0x46   :  { %1912 = dma.done.wait [#allocation9], 1088  }
  0x47   :  { %1913 = vsyncadd [#allocation9], 4294966208 }
  0x48   :  { %1914 = dma.done.wait [#allocation12], 2048  }
  0x49   :  { %1915 = vsyncadd [#allocation12], 4294965248  ;;  %v1924_v0 = vmov 0.0   ;;  %vm1925_vm0 = vmmov 0   ;;  %vm163_vm1 = vcmask 1043456   ;;  %v2009_v2 = vld [vmem:[#allocation6] sm:$0xff] }
  0x4a   :  { %1605 = vmatprep.subr.bf16.mxu0 %v1924_v0  ;;  %1621 = vmatprep.mubr.msk.bf16.mxu0 %vm1925_vm0, %v1924_v0  ;;  %v150_v1 = vld [vmem:[#allocation8] sm:$0xf]  ;;  %v72_v4 = vmul.f32 0.1, %v2009_v2  ;;  %vm77_vm2 = vcmask 64512   ;;  %v1738_v31 = vld [vmem:[#allocation10] sm:$0xff]  }
  0x4b   :  { %1725 = vmatprep.subr.msk.bf16.mxu1 %vm163_vm1, %v150_v1  ;;  %v165_v3 = vsel %vm163_vm1, %v150_v1, 0  ;;  %v1739_v36 = vld [vmem:[#allocation10 + $0x8] sm:$0xff]   ;;  %v1740_v40 = vld [vmem:[#allocation10 + $0x10] sm:$0xff]   ;;  %v1741_v43 = vld [vmem:[#allocation10 + $0x18] sm:$0xff]   ;;  %v1926_v61 = vmov 0  }
  0x4c   :  { %1576 = vmatpush3.bf16.msra.mxu1 %v165_v3  ;;  %vm74_vm3 = vcmp.gt.f32.partialorder %v72_v4, 1.0  ;;  %v1742_v45 = vld [vmem:[#allocation10 + $0x20] sm:$0xff]   ;;  %v1743_v49 = vld [vmem:[#allocation10 + $0x28] sm:$0xff]   ;;  %v1744_v54 = vld [vmem:[#allocation10 + $0x30] sm:$0xff]  }
  0x4d   :  { %1585 = vmatprep.subr.bf16.mxu1 %v1924_v0  ;;  %v1397_v5 = vsel %vm74_vm3, 1.0, %v1924_v0  ;;  %v1745_v58 = vld [vmem:[#allocation10 + $0x38] sm:$0xff]   ;;  %v1746_v62 = vld [vmem:[#allocation10] sm:$0xff]   ;;  %v1747_v63 = vld [vmem:[#allocation10 + $0x8] sm:$0xff]  }
  0x4e   :  { %78 = vst.msk [vmem:[#allocation2] sm:$0xff] %vm77_vm2, %v1397_v5  ;;  %v79_v6 = vsub.f32 1.0, %v1397_v5  ;;  %1606 = vmatpush3.bf16.msra.mxu0 %v1746_v62  ;;  %v1748_v1 = vld [vmem:[#allocation10 + $0x10] sm:$0xff]   ;;  %v1750_v3 = vld [vmem:[#allocation10 + $0x20] sm:$0xff]  }
  0x4f   :  { %1607 = vmatprep.subr.bf16.mxu0 %v1924_v0  ;;  %v1752_v5 = vld [vmem:[#allocation10 + $0x30] sm:$0xff]  }
  0x50   :  { %v80_v7 = vmul.f32 %v79_v6, %v72_v4  ;;  %v1751_v4 = vld [vmem:[#allocation10 + $0x28] sm:$0xff]   ;;  %v1753_v6 = vld [vmem:[#allocation10 + $0x38] sm:$0xff]  }
  0x52   :  { %v81_v8 = vsub.f32 %v2009_v2, %v80_v7  ;;  %1608 = vmatpush3.bf16.msra.mxu0 %v1747_v63 }
  0x53   :  { %1609 = vmatprep.subr.bf16.mxu0 %v1924_v0 }
  0x54   :  { %v82_v9 = vmul.f32 0.1, %v81_v8  ;;  %v1755_v8 = vld [vmem:[#allocation10 + $0x8] sm:$0xff]  }
  0x55   :  { %v139_v14 = vld [vmem:[#allocation2] sm:$0xff] }
  0x56   :  { %v83_v10 = vadd.f32 %v82_v9, %v80_v7  ;;  %1610 = vmatpush3.bf16.msra.mxu0 %v1748_v1  ;;  %v1754_v7 = vld [vmem:[#allocation10] sm:$0xff]   ;;  %v1756_v9 = vld [vmem:[#allocation10 + $0x10] sm:$0xff]  }
  0x57   :  { %1611 = vmatprep.subr.bf16.mxu0 %v1924_v0 }
  0x58   :  { %vm84_vm4 = vcmp.gt.f32.partialorder %v83_v10, 1.0 }
  0x59   :  { %v1398_v11 = vsel %vm84_vm4, 1.0, %v1924_v0 }
  0x5a   :  { %88 = vst.msk [vmem:[#allocation2 + $0x8] sm:$0xff] %vm77_vm2, %v1398_v11  ;;  %v89_v12 = vsub.f32 1.0, %v1398_v11  ;;  %v1758_v11 = vld [vmem:[#allocation10 + $0x20] sm:$0xff]  }
  0x5c   :  { %v90_v13 = vmul.f32 %v89_v12, %v83_v10  ;;  %v1757_v10 = vld [vmem:[#allocation10 + $0x18] sm:$0xff]   ;;  %v1759_v12 = vld [vmem:[#allocation10 + $0x28] sm:$0xff]  }
  0x5e   :  { %v91_v15 = vsub.f32 %v2009_v2, %v90_v13 }
  0x60   :  { %v92_v16 = vmul.f32 0.1, %v91_v15 }
  0x61   :  { %v140_v17 = vld [vmem:[#allocation2 + $0x8] sm:$0xff] }
  0x62   :  { %v93_v18 = vadd.f32 %v92_v16, %v90_v13  ;;  %v146_v19 = vpack.c.bf16 %v140_v17, %v139_v14 }
  0x64   :  { %1577 = vmatprep.mubr.msk.bf16.mxu1 %vm77_vm2, %v146_v19  ;;  %vm94_vm5 = vcmp.gt.f32.partialorder %v93_v18, 1.0 }
  0x65   :  { %v1399_v20 = vsel %vm94_vm5, 1.0, %v1924_v0 }
  0x66   :  { %98 = vst.msk [vmem:[#allocation2 + $0x10] sm:$0xff] %vm77_vm2, %v1399_v20  ;;  %v99_v21 = vsub.f32 1.0, %v1399_v20 }
  0x68   :  { %v100_v22 = vmul.f32 %v99_v21, %v93_v18 }
  0x6a   :  { %v101_v23 = vsub.f32 %v2009_v2, %v100_v22 }
  0x6c   :  { %v102_v24 = vmul.f32 0.1, %v101_v23 }
  0x6d   :  { %v141_v29 = vld [vmem:[#allocation2 + $0x10] sm:$0xff] }
  0x6e   :  { %v103_v25 = vadd.f32 %v102_v24, %v100_v22 }
  0x70   :  { %vm104_vm6 = vcmp.gt.f32.partialorder %v103_v25, 1.0 }
  0x71   :  { %v1400_v26 = vsel %vm104_vm6, 1.0, %v1924_v0 }
  0x72   :  { %108 = vst.msk [vmem:[#allocation2 + $0x18] sm:$0xff] %vm77_vm2, %v1400_v26  ;;  %v109_v27 = vsub.f32 1.0, %v1400_v26  ;;  %v1927_v26 = vmov 1.0|1.0  }
  0x74   :  { %v110_v28 = vmul.f32 %v109_v27, %v103_v25  ;;  %v1760_v27 = vld [vmem:[#allocation10 + $0x30] sm:$0xff]  }
  0x76   :  { %v111_v30 = vsub.f32 %v2009_v2, %v110_v28 }
  0x78   :  { %v112_v32 = vmul.f32 0.1, %v111_v30  ;;  %v1763_v30 = vld [vmem:[#allocation10 + $0x8] sm:$0xff]  }
  0x79   :  { %v142_v33 = vld [vmem:[#allocation2 + $0x18] sm:$0xff] }
  0x7a   :  { %v147_v34 = vpack.c.bf16 %v142_v33, %v141_v29  ;;  %v113_v35 = vadd.f32 %v112_v32, %v110_v28  ;;  %v1761_v28 = vld [vmem:[#allocation10 + $0x38] sm:$0xff]   ;;  %v1762_v29 = vld [vmem:[#allocation10] sm:$0xff]  }
  0x7b   :  { %v1765_v32 = vld [vmem:[#allocation10 + $0x18] sm:$0xff]   ;;  %v1766_v33 = vld [vmem:[#allocation10 + $0x20] sm:$0xff]  }
  0x7c   :  { %1578 = vmatmul.mubr.msk.bf16.vlgmr.msra.gmra.mrb[0].mxu1 %vm77_vm2, %v147_v34  ;;  %vm114_vm7 = vcmp.gt.f32.partialorder %v113_v35, 1.0  ;;  %v1767_v34 = vld [vmem:[#allocation10 + $0x28] sm:$0xff]  }
  0x7d   :  { %1586 = vmatpush3.bf16.msra.mxu1 %v1738_v31  ;;  %v1401_v37 = vsel %vm114_vm7, 1.0, %v1924_v0  ;;  %v1764_v31 = vld [vmem:[#allocation10 + $0x10] sm:$0xff]  }
  0x7e   :  { %1587 = vmatprep.subr.bf16.mxu1 %v1924_v0  ;;  %118 = vst.msk [vmem:[#allocation2 + $0x20] sm:$0xff] %vm77_vm2, %v1401_v37  ;;  %v119_v38 = vsub.f32 1.0, %v1401_v37 }
  0x80   :  { %v120_v39 = vmul.f32 %v119_v38, %v113_v35 }
  0x81   :  { %1588 = vmatpush3.bf16.msra.mxu1 %v1739_v36 }
  0x82   :  { %1589 = vmatprep.subr.bf16.mxu1 %v1924_v0  ;;  %v121_v41 = vsub.f32 %v2009_v2, %v120_v39 }
  0x84   :  { %v122_v42 = vmul.f32 0.1, %v121_v41 }
  0x85   :  { %1590 = vmatpush3.bf16.msra.mxu1 %v1740_v40  ;;  %v143_v51 = vld [vmem:[#allocation2 + $0x20] sm:$0xff] }
  0x86   :  { %1591 = vmatprep.subr.bf16.mxu1 %v1924_v0  ;;  %v123_v44 = vadd.f32 %v122_v42, %v120_v39 }
  0x88   :  { %vm124_vm8 = vcmp.gt.f32.partialorder %v123_v44, 1.0 }
  0x89   :  { %1592 = vmatpush3.bf16.msra.mxu1 %v1741_v43  ;;  %v1402_v46 = vsel %vm124_vm8, 1.0, %v1924_v0 }
  0x8a   :  { %1593 = vmatprep.subr.bf16.mxu1 %v1924_v0  ;;  %128 = vst.msk [vmem:[#allocation2 + $0x28] sm:$0xff] %vm77_vm2, %v1402_v46  ;;  %v129_v47 = vsub.f32 1.0, %v1402_v46 }
  0x8c   :  { %v130_v48 = vmul.f32 %v129_v47, %v123_v44 }
  0x8d   :  { %1594 = vmatpush3.bf16.msra.mxu1 %v1742_v45 }
  0x8e   :  { %1595 = vmatprep.subr.bf16.mxu1 %v1924_v0  ;;  %v131_v50 = vsub.f32 %v2009_v2, %v130_v48  ;;  %v1749_v2 = vld [vmem:[#allocation10 + $0x18] sm:$0xff]  }
  0x8f   :  { %1612 = vmatpush3.bf16.msra.mxu0 %v1749_v2 }
  0x90   :  { %v132_v52 = vmul.f32 0.1, %v131_v50  ;;  %1613 = vmatprep.subr.bf16.mxu0 %v1924_v0  ;;  %v1768_v50 = vld [vmem:[#allocation10 + $0x30] sm:$0xff]  }
  0x91   :  { %1596 = vmatpush3.bf16.msra.mxu1 %v1743_v49  ;;  %v144_v53 = vld [vmem:[#allocation2 + $0x28] sm:$0xff] }
  0x92   :  { %v148_v55 = vpack.c.bf16 %v144_v53, %v143_v51  ;;  %v133_v56 = vadd.f32 %v132_v52, %v130_v48  ;;  %1597 = vmatprep.subr.bf16.mxu1 %v1924_v0  ;;  %v1769_v51 = vld [vmem:[#allocation10 + $0x38] sm:$0xff]   ;;  %v1770_v52 = vld [vmem:[#allocation10] sm:$0xff]   ;;  %v1771_v53 = vld [vmem:[#allocation10 + $0x8] sm:$0xff]  }
  0x93   :  { %1614 = vmatpush3.bf16.msra.mxu0 %v1750_v3 }
  0x94   :  { %1581 = vmatprep.mubr.msk.bf16.mxu1 %vm77_vm2, %v148_v55  ;;  %vm134_vm9 = vcmp.gt.f32.partialorder %v133_v56, 1.0  ;;  %1615 = vmatprep.subr.bf16.mxu0 %v1924_v0  ;;  %v1773_v55 = vld [vmem:[#allocation10 + $0x18] sm:$0xff]   ;;  %v1774_v56 = vld [vmem:[#allocation10 + $0x20] sm:$0xff]  }
  0x95   :  { %v1403_v57 = vsel %vm134_vm9, 1.0, %v1924_v0  ;;  %1598 = vmatpush3.bf16.msra.mxu1 %v1744_v54  ;;  %v1772_v54 = vld [vmem:[#allocation10 + $0x10] sm:$0xff]  }
  0x96   :  { %138 = vst.msk [vmem:[#allocation2 + $0x30] sm:$0xff] %vm77_vm2, %v1403_v57  ;;  %1599 = vmatprep.subr.bf16.mxu1 %v1924_v0  ;;  %v1775_v57 = vld [vmem:[#allocation10 + $0x28] sm:$0xff]  }
  0x97   :  { %1616 = vmatpush3.bf16.msra.mxu0 %v1751_v4 }
  0x98   :  { %1617 = vmatprep.subr.bf16.mxu0 %v1924_v0 }
  0x99   :  { %1600 = vmatpush3.bf16.msra.mxu1 %v1745_v58 }
  0x9a   :  { %1625 = vmatprep.subr.bf16.mxu1 %v1924_v0 }
  0x9b   :  { %1618 = vmatpush3.bf16.msra.mxu0 %v1752_v5 }
  0x9c   :  { %1619 = vmatprep.subr.bf16.mxu0 %v1924_v0 }
  0x9d   :  { %v145_v59 = vld [vmem:[#allocation2 + $0x30] sm:$0xff] }
  0x9e   :  { %v149_v60 = vpack.c.bf16 %v145_v59, %v145_v59 }
  0x9f   :  { %1620 = vmatpush3.bf16.msra.mxu0 %v1753_v6 }
  0xa0   :  { %1582 = vmatmul.mubr.msk.bf16.gmra.mrb[4].mxu1 %vm77_vm2, %v149_v60  ;;  %1645 = vmatprep.subr.bf16.mxu0 %v1924_v0 }
  0xa1   :  { %1601 = vmatprep.mubr.msk.bf16.mxu1 %vm1925_vm0, %v1924_v0 }
  0xa8   :  { %1602 = vmatmul.mubr.bf16.vlgmr.msra.gmra.mrb[8].mxu1 %v1926_v61 }
  0xa9   :  { %1641 = vmatprep.mubr.msk.bf16.mxu1 %vm1925_vm0, %v1924_v0  ;;  %1626 = vmatpush3.bf16.msra.mxu1 %v1754_v7  ;;  %v1776_v7 = vld [vmem:[#allocation10 + $0x30] sm:$0xff]  }
  0xaa   :  { %1627 = vmatprep.subr.bf16.mxu1 %v1924_v0 }
  0xad   :  { %1628 = vmatpush3.bf16.msra.mxu1 %v1755_v8  ;;  %v1777_v8 = vld [vmem:[#allocation10 + $0x38] sm:$0xff]  }
  0xae   :  { %1629 = vmatprep.subr.bf16.mxu1 %v1924_v0 }
  0xb1   :  { %1630 = vmatpush3.bf16.msra.mxu1 %v1756_v9  ;;  %v1778_v9 = vld [vmem:[#allocation10] sm:$0xff]  }
  0xb2   :  { %1631 = vmatprep.subr.bf16.mxu1 %v1924_v0 }
  0xb5   :  { %1632 = vmatpush3.bf16.msra.mxu1 %v1757_v10  ;;  %v1779_v10 = vld [vmem:[#allocation10 + $0x8] sm:$0xff]  }
  0xb6   :  { %1633 = vmatprep.subr.bf16.mxu1 %v1924_v0 }
  0xb9   :  { %1634 = vmatpush3.bf16.msra.mxu1 %v1758_v11  ;;  %v1780_v11 = vld [vmem:[#allocation10 + $0x10] sm:$0xff]  }
  0xba   :  { %1635 = vmatprep.subr.bf16.mxu1 %v1924_v0 }
  0xbd   :  { %1636 = vmatpush3.bf16.msra.mxu1 %v1759_v12  ;;  %v1781_v12 = vld [vmem:[#allocation10 + $0x18] sm:$0xff]  }
  0xbe   :  { %1637 = vmatprep.subr.bf16.mxu1 %v1924_v0 }
  0xc1   :  { %1638 = vmatpush3.bf16.msra.mxu1 %v1760_v27 }
  0xc2   :  { %1639 = vmatprep.subr.bf16.mxu1 %v1924_v0 }
  0xc5   :  { %1640 = vmatpush3.bf16.msra.mxu1 %v1761_v28 }
  0xc6   :  { %1665 = vmatprep.subr.bf16.mxu1 %v1924_v0 }
 0x14f   :  { %v2064_v13 = vpop.f32.mrb[0].mxu1 }
 0x150   :  { %v201_v14 = vpop.f32.mrb[1].mxu1 }
 0x151   :  { %v2066_v15 = vpop.f32.mrb[2].mxu1 }
 0x152   :  { %v204_v16 = vpop.f32.mrb[3].mxu1 }
 0x173   :  { %v2068_v17 = vpop.f32.mrb[4].mxu1 }
 0x174   :  { %v2070_v18 = vpop.f32.mrb[5].mxu1 }
 0x175   :  { %v1584_v19 = vpop.f32.mrb[6].mxu1 }
 0x176   :  { %v2072_v20 = vpop.f32.mrb[7].mxu1 }
 0x17b   :  { %v337_v21 = vpop.f32.mrb[8].mxu1 }
 0x17c   :  { %v2074_v22 = vadd.f32 %v337_v21, %v201_v14  ;;  %v1603_v23 = vpop.f32.mrb[9].mxu1  ;;  %v1783_v14 = vld [vmem:[#allocation10 + $0x28] sm:$0xff]  }
 0x17d   :  { %v340_v24 = vpop.f32.mrb[10].mxu1 }
 0x17e   :  { %vm343_vm10 = vcmp.gt.f32.partialorder %v2074_v22, 0.6  ;;  %v1604_v25 = vpop.f32.mrb[11].mxu1  ;;  %v349_v36 = vmul.f32 0.8, %v2074_v22  ;;  %v1816_v22 = vld [vmem:[#allocation10 + $0x30] sm:$0xff]  }
 0x17f   :  { %vm1425_vm11 = vmpackc.low %vm343_vm10, %vm343_vm10  ;;  %v1416_v35 = vsel %vm343_vm10, 1.0, %v1924_v0 }
 0x180   :  { %1622 = vmatmul.mubr.msk.bf16.vlgmr.msra.gmra.mrb[0].mxu0 %vm1425_vm11, %v1927_v26  ;;  %v460_v38 = vmul.f32 0.1, %v1416_v35  ;;  %v457_v43 = vmul.f32 0.6, %v1416_v35  ;;  %v579_v47 = vmul.f32 0.95, %v1416_v35 }
 0x181   :  { %1661 = vmatprep.mubr.msk.bf16.mxu0 %vm1925_vm0, %v1924_v0  ;;  %1646 = vmatpush3.bf16.msra.mxu0 %v1762_v29  ;;  %vm1365_vm11 = vcmask 31744  }
 0x182   :  { %1647 = vmatprep.subr.bf16.mxu0 %v1924_v0  ;;  %v2095_v45 = vadd.f32 0.6, %v460_v38  ;;  %v1785_v38 = vld [vmem:[#allocation10 + $0x38] sm:$0xff]  }
 0x185   :  { %1648 = vmatpush3.bf16.msra.mxu0 %v1763_v30 }
 0x186   :  { %1649 = vmatprep.subr.bf16.mxu0 %v1924_v0 }
 0x189   :  { %1650 = vmatpush3.bf16.msra.mxu0 %v1764_v31 }
 0x18a   :  { %1651 = vmatprep.subr.bf16.mxu0 %v1924_v0 }
 0x18d   :  { %1652 = vmatpush3.bf16.msra.mxu0 %v1765_v32 }
 0x18e   :  { %1653 = vmatprep.subr.bf16.mxu0 %v1924_v0 }
 0x191   :  { %1654 = vmatpush3.bf16.msra.mxu0 %v1766_v33 }
 0x192   :  { %1655 = vmatprep.subr.bf16.mxu0 %v1924_v0 }
 0x195   :  { %1656 = vmatpush3.bf16.msra.mxu0 %v1767_v34 }
 0x196   :  { %1657 = vmatprep.subr.bf16.mxu0 %v1924_v0 }
 0x199   :  { %1658 = vmatpush3.bf16.msra.mxu0 %v1768_v50 }
 0x19a   :  { %1659 = vmatprep.subr.bf16.mxu0 %v1924_v0 }
 0x19d   :  { %1660 = vmatpush3.bf16.msra.mxu0 %v1769_v51 }
 0x19e   :  { %1685 = vmatprep.subr.bf16.mxu0 %v1924_v0 }
 0x253   :  { %v449_v37 = vpop.f32.mrb[0].mxu0 }
 0x254   :  { %v455_v39 = vadd.f32 %v449_v37, %v349_v36  ;;  %v1623_v40 = vpop.f32.mrb[1].mxu0  ;;  %v1784_v37 = vld [vmem:[#allocation10 + $0x30] sm:$0xff]  }
 0x255   :  { %v452_v41 = vpop.f32.mrb[2].mxu0  ;;  %v1810_v40 = vld [vmem:[#allocation10] sm:$0xff]  }
 0x256   :  { %v456_v42 = vadd.f32 %v455_v39, %v204_v16  ;;  %v1624_v44 = vpop.f32.mrb[3].mxu0  ;;  %v1788_v39 = vld [vmem:[#allocation11 + $0x4] ss:$8 sps:$4 sm:$0xff]  }
 0x257   :  { %v1811_v41 = vld [vmem:[#allocation10 + $0x8] sm:$0xff]   ;;  %v1814_v44 = vld [vmem:[#allocation10 + $0x20] sm:$0xff]  }
 0x258   :  { %v2097_v46 = vsub.f32 %v456_v42, %v457_v43  ;;  %v1812_v42 = vld [vmem:[#allocation10 + $0x10] sm:$0xff]   ;;  %v1813_v43 = vld [vmem:[#allocation10 + $0x18] sm:$0xff]  }
 0x25a   :  { %vm462_vm12 = vcmp.gt.f32.partialorder %v2097_v46, %v2095_v45  ;;  %v469_v58 = vmul.f32 0.8, %v2097_v46  ;;  %v1817_v45 = vld [vmem:[#allocation10 + $0x38] sm:$0xff]  }
 0x25b   :  { %vm1436_vm13 = vmpackc.low %vm462_vm12, %vm462_vm12  ;;  %v1427_v48 = vsel %vm462_vm12, 1.0, %v1924_v0 }
 0x25c   :  { %1642 = vmatmul.mubr.msk.bf16.vlgmr.msra.gmra.mrb[12].mxu1 %vm1436_vm13, %v1927_v26  ;;  %v2110_v49 = vadd.f32 %v1427_v48, %v579_v47  ;;  %v577_v3 = vmul.f32 0.6, %v1427_v48  ;;  %v1815_v47 = vld [vmem:[#allocation10 + $0x28] sm:$0xff]   ;;  %vm1499_vm4 = vmpackc.low %vm462_vm12, %vm343_vm10  ;;  %vm1378_vm12 = vcmask 7168  }
 0x25d   :  { %1681 = vmatprep.mubr.msk.bf16.mxu1 %vm1925_vm0, %v1924_v0  ;;  %1666 = vmatpush3.bf16.msra.mxu1 %v1770_v52 }
 0x25e   :  { %1667 = vmatprep.subr.bf16.mxu1 %v1924_v0  ;;  %v581_v62 = vmul.f32 0.1, %v2110_v49  ;;  %v700_v19 = vmul.f32 0.95, %v2110_v49 }
 0x260   :  { %v2127_v6 = vadd.f32 0.6, %v581_v62  ;;  %v1794_v62 = vld [vmem:[#allocation11 + $0x24] ss:$8 sps:$4 sm:$0xff]  }
 0x261   :  { %1668 = vmatpush3.bf16.msra.mxu1 %v1771_v53 }
 0x262   :  { %1669 = vmatprep.subr.bf16.mxu1 %v1924_v0 }
 0x265   :  { %1670 = vmatpush3.bf16.msra.mxu1 %v1772_v54 }
 0x266   :  { %1671 = vmatprep.subr.bf16.mxu1 %v1924_v0 }
 0x269   :  { %1672 = vmatpush3.bf16.msra.mxu1 %v1773_v55 }
 0x26a   :  { %1673 = vmatprep.subr.bf16.mxu1 %v1924_v0 }
 0x26d   :  { %1674 = vmatpush3.bf16.msra.mxu1 %v1774_v56 }
 0x26e   :  { %1675 = vmatprep.subr.bf16.mxu1 %v1924_v0 }
 0x271   :  { %1676 = vmatpush3.bf16.msra.mxu1 %v1775_v57 }
 0x272   :  { %1677 = vmatprep.subr.bf16.mxu1 %v1924_v0 }
 0x275   :  { %1678 = vmatpush3.bf16.msra.mxu1 %v1776_v7  ;;  %v1803_v7 = vld [vmem:[#allocation11 + $0x54] ss:$8 sps:$4 sm:$0xff]  }
 0x276   :  { %1679 = vmatprep.subr.bf16.mxu1 %v1924_v0 }
 0x279   :  { %1680 = vmatpush3.bf16.msra.mxu1 %v1777_v8  ;;  %v1801_v8 = vld [vmem:[#allocation11 + $0x50] ss:$8 sps:$4 sm:$0xff]  }
 0x27a   :  { %1705 = vmatprep.subr.bf16.mxu1 %v1924_v0 }
 0x32f   :  { %v569_v59 = vpop.f32.mrb[12].mxu1 }
 0x330   :  { %v575_v60 = vadd.f32 %v569_v59, %v469_v58  ;;  %v1643_v63 = vpop.f32.mrb[13].mxu1  ;;  %v1786_v59 = vld [vmem:[#allocation11] ss:$8 sps:$4 sm:$0xff]  }
 0x331   :  { %v572_v1 = vpop.f32.mrb[14].mxu1  ;;  %v1792_v63 = vld [vmem:[#allocation11 + $0x20] ss:$8 sps:$4 sm:$0xff]  }
 0x332   :  { %v576_v2 = vadd.f32 %v2064_v13, %v575_v60  ;;  %v1644_v4 = vpop.f32.mrb[15].mxu1  ;;  %v1782_v13 = vld [vmem:[#allocation10 + $0x20] sm:$0xff]   ;;  %v1791_v60 = vld [vmem:[#allocation11 + $0x14] ss:$8 sps:$4 sm:$0xff]  }
 0x333   :  { %v1797_v1 = vld [vmem:[#allocation11 + $0x34] ss:$8 sps:$4 sm:$0xff]   ;;  %v1798_v4 = vld [vmem:[#allocation11 + $0x40] ss:$8 sps:$4 sm:$0xff]  }
 0x334   :  { %v2125_v5 = vsub.f32 %v576_v2, %v577_v3  ;;  %v1795_v2 = vld [vmem:[#allocation11 + $0x30] ss:$8 sps:$4 sm:$0xff]   ;;  %v1800_v3 = vld [vmem:[#allocation11 + $0x44] ss:$8 sps:$4 sm:$0xff]  }
 0x336   :  { %vm583_vm14 = vcmp.gt.f32.partialorder %v2125_v5, %v2127_v6  ;;  %v590_v23 = vmul.f32 0.8, %v2125_v5 }
 0x337   :  { %vm1447_vm15 = vmpackc.low %vm583_vm14, %vm583_vm14  ;;  %v1438_v16 = vsel %vm583_vm14, 1.0, %v1924_v0 }
 0x338   :  { %1662 = vmatmul.mubr.msk.bf16.vlgmr.msra.gmra.mrb[4].mxu0 %vm1447_vm15, %v1927_v26  ;;  %v701_v21 = vadd.f32 %v1438_v16, %v700_v19  ;;  %v698_v31 = vmul.f32 0.6, %v1438_v16 }
 0x339   :  { %1701 = vmatprep.mubr.msk.bf16.mxu0 %vm1925_vm0, %v1924_v0  ;;  %1686 = vmatpush3.bf16.msra.mxu0 %v1778_v9  ;;  %v1806_v9 = vld [vmem:[#allocation11 + $0x64] ss:$8 sps:$4 sm:$0xff]  }
 0x33a   :  { %1687 = vmatprep.subr.bf16.mxu0 %v1924_v0  ;;  %v702_v27 = vmul.f32 0.1, %v701_v21  ;;  %v821_v35 = vmul.f32 0.95, %v701_v21 }
 0x33c   :  { %v2155_v34 = vadd.f32 0.6, %v702_v27 }
 0x33d   :  { %1688 = vmatpush3.bf16.msra.mxu0 %v1779_v10  ;;  %v1804_v10 = vld [vmem:[#allocation11 + $0x60] ss:$8 sps:$4 sm:$0xff]  }
 0x33e   :  { %1689 = vmatprep.subr.bf16.mxu0 %v1924_v0 }
 0x341   :  { %1690 = vmatpush3.bf16.msra.mxu0 %v1780_v11  ;;  %v1809_v11 = vld [vmem:[#allocation11 + $0x74] ss:$8 sps:$4 sm:$0xff]  }
 0x342   :  { %1691 = vmatprep.subr.bf16.mxu0 %v1924_v0 }
 0x345   :  { %1692 = vmatpush3.bf16.msra.mxu0 %v1781_v12  ;;  %v1807_v12 = vld [vmem:[#allocation11 + $0x70] ss:$8 sps:$4 sm:$0xff]  }
 0x346   :  { %1693 = vmatprep.subr.bf16.mxu0 %v1924_v0 }
 0x349   :  { %1694 = vmatpush3.bf16.msra.mxu0 %v1782_v13 }
 0x34a   :  { %1695 = vmatprep.subr.bf16.mxu0 %v1924_v0 }
 0x34d   :  { %1696 = vmatpush3.bf16.msra.mxu0 %v1783_v14 }
 0x34e   :  { %1697 = vmatprep.subr.bf16.mxu0 %v1924_v0 }
 0x351   :  { %1698 = vmatpush3.bf16.msra.mxu0 %v1784_v37 }
 0x352   :  { %1699 = vmatprep.subr.bf16.mxu0 %v1924_v0 }
 0x355   :  { %1700 = vmatpush3.bf16.msra.mxu0 %v1785_v38 }
 0x356   :  { %1179 = vmatprep.subr.bf16.mxu0 %v1788_v39 }
 0x40b   :  { %v690_v24 = vpop.f32.mrb[4].mxu0 }
 0x40c   :  { %v696_v25 = vadd.f32 %v690_v24, %v590_v23  ;;  %v1663_v28 = vpop.f32.mrb[5].mxu0 }
 0x40d   :  { %v693_v29 = vpop.f32.mrb[6].mxu0 }
 0x40e   :  { %v697_v30 = vadd.f32 %v2066_v15, %v696_v25  ;;  %v1664_v32 = vpop.f32.mrb[7].mxu0 }
 0x410   :  { %v2153_v33 = vsub.f32 %v697_v30, %v698_v31 }
 0x412   :  { %vm704_vm1 = vcmp.gt.f32.partialorder %v2153_v33, %v2155_v34  ;;  %v711_v48 = vmul.f32 0.8, %v2153_v33 }
 0x413   :  { %vm1458_vm2 = vmpackc.low %vm704_vm1, %vm704_vm1  ;;  %v1449_v15 = vsel %vm704_vm1, 1.0, %v1924_v0 }
 0x414   :  { %1682 = vmatmul.mubr.msk.bf16.vlgmr.msra.gmra.mrb[16].mxu1 %vm1458_vm2, %v1927_v26  ;;  %v2168_v36 = vadd.f32 %v1449_v15, %v821_v35  ;;  %v819_v55 = vmul.f32 0.6, %v1449_v15  ;;  %vm1501_vm5 = vmpackc.low %vm704_vm1, %vm583_vm14 }
 0x415   :  { %1721 = vmatprep.mubr.msk.bf16.mxu1 %vm1925_vm0, %v1924_v0  ;;  %1706 = vmatpush3.bf16.msra.mxu1 %v1810_v40 }
 0x416   :  { %1707 = vmatprep.subr.bf16.mxu1 %v1924_v0  ;;  %v823_v51 = vmul.f32 0.1, %v2168_v36  ;;  %v942_v5 = vmul.f32 0.95, %v2168_v36 }
 0x418   :  { %v2184_v58 = vadd.f32 0.6, %v823_v51 }
 0x419   :  { %1708 = vmatpush3.bf16.msra.mxu1 %v1811_v41 }
 0x41a   :  { %1709 = vmatprep.subr.bf16.mxu1 %v1924_v0 }
 0x41d   :  { %1710 = vmatpush3.bf16.msra.mxu1 %v1812_v42 }
 0x41e   :  { %1711 = vmatprep.subr.bf16.mxu1 %v1924_v0 }
 0x421   :  { %1712 = vmatpush3.bf16.msra.mxu1 %v1813_v43 }
 0x422   :  { %1713 = vmatprep.subr.bf16.mxu1 %v1924_v0 }
 0x425   :  { %1714 = vmatpush3.bf16.msra.mxu1 %v1814_v44 }
 0x426   :  { %1715 = vmatprep.subr.bf16.mxu1 %v1924_v0 }
 0x429   :  { %1716 = vmatpush3.bf16.msra.mxu1 %v1815_v47 }
 0x42a   :  { %1717 = vmatprep.subr.bf16.mxu1 %v1924_v0 }
 0x42d   :  { %1718 = vmatpush3.bf16.msra.mxu1 %v1816_v22 }
 0x42e   :  { %1719 = vmatprep.subr.bf16.mxu1 %v1924_v0 }
 0x431   :  { %1720 = vmatpush3.bf16.msra.mxu1 %v1817_v45 }
 0x4e7   :  { %v811_v49 = vpop.f32.mrb[16].mxu1 }
 0x4e8   :  { %v817_v50 = vadd.f32 %v811_v49, %v711_v48  ;;  %v1683_v52 = vpop.f32.mrb[17].mxu1 }
 0x4e9   :  { %v814_v53 = vpop.f32.mrb[18].mxu1 }
 0x4ea   :  { %v818_v54 = vadd.f32 %v817_v50, %v2070_v18  ;;  %v1684_v56 = vpop.f32.mrb[19].mxu1  ;;  %v1789_v18 = vld [vmem:[#allocation11 + $0x10] ss:$8 sps:$4 sm:$0xff]  }
 0x4ec   :  { %v2182_v57 = vsub.f32 %v818_v54, %v819_v55 }
 0x4ee   :  { %vm825_vm0 = vcmp.gt.f32.partialorder %v2182_v57, %v2184_v58  ;;  %v832_v13 = vmul.f32 0.8, %v2182_v57 }
 0x4ef   :  { %vm1469_vm3 = vmpackc.low %vm825_vm0, %vm825_vm0  ;;  %v1460_v46 = vsel %vm825_vm0, 1.0, %v1924_v0 }
 0x4f0   :  { %1702 = vmatmul.mubr.msk.bf16.vlgmr.msra.gmra.mrb[8].mxu0 %vm1469_vm3, %v1927_v26  ;;  %v943_v6 = vadd.f32 %v1460_v46, %v942_v5  ;;  %v940_v25 = vmul.f32 0.6, %v1460_v46 }
 0x4f1   :  { %1180 = vmatpush1.bf16.msra.mxu0 %v1786_v59  ;;  %1211 = vmatprep.mubr.bf16.mxu0 %v1926_v61 }
 0x4f2   :  { %1181 = vmatprep.subr.bf16.mxu0 %v1791_v60  ;;  %v944_v19 = vmul.f32 0.1, %v943_v6  ;;  %v1063_v30 = vmul.f32 0.95, %v943_v6 }
 0x4f4   :  { %v945_v29 = vadd.f32 0.6, %v944_v19 }
 0x4f5   :  { %1182 = vmatpush1.bf16.msra.mxu0 %v1789_v18 }
 0x4f6   :  { %1183 = vmatprep.subr.bf16.mxu0 %v1794_v62 }
 0x4f9   :  { %1184 = vmatpush1.bf16.msra.mxu0 %v1792_v63 }
 0x4fa   :  { %1185 = vmatprep.subr.bf16.mxu0 %v1797_v1 }
 0x4fd   :  { %1186 = vmatpush1.bf16.msra.mxu0 %v1795_v2 }
 0x4fe   :  { %1187 = vmatprep.subr.bf16.mxu0 %v1800_v3 }
 0x501   :  { %1188 = vmatpush1.bf16.msra.mxu0 %v1798_v4 }
 0x502   :  { %1189 = vmatprep.subr.bf16.mxu0 %v1803_v7 }
 0x505   :  { %1190 = vmatpush1.bf16.msra.mxu0 %v1801_v8 }
 0x506   :  { %1191 = vmatprep.subr.bf16.mxu0 %v1806_v9 }
 0x509   :  { %1192 = vmatpush1.bf16.msra.mxu0 %v1804_v10 }
 0x50a   :  { %1193 = vmatprep.subr.bf16.mxu0 %v1809_v11 }
 0x50d   :  { %1194 = vmatpush1.bf16.msra.mxu0 %v1807_v12 }
 0x510   :  { %1500 = vmatmul.mubr.msk.bf16.vlgmr.msra.gmra.mrb[12].mxu0 %vm1499_vm4, %v1927_v26 }
 0x511   :  { %1221 = vmatprep.mubr.bf16.mxu0 %v1926_v61 }
 0x518   :  { %1502 = vmatmul.mubr.msk.bf16.gmra.mrb[16].mxu0 %vm1501_vm5, %v1927_v26 }
 0x519   :  { %1231 = vmatprep.mubr.bf16.mxu0 %v1926_v61 }
 0x5c3   :  { %v932_v14 = vpop.f32.mrb[8].mxu0 }
 0x5c4   :  { %v938_v16 = vadd.f32 %v932_v14, %v832_v13  ;;  %v1703_v21 = vpop.f32.mrb[9].mxu0 }
 0x5c5   :  { %v935_v23 = vpop.f32.mrb[10].mxu0 }
 0x5c6   :  { %v939_v24 = vadd.f32 %v938_v16, %v2072_v20  ;;  %v1704_v27 = vpop.f32.mrb[11].mxu0 }
 0x5c8   :  { %v941_v28 = vsub.f32 %v939_v24, %v940_v25 }
 0x5ca   :  { %vm946_vm6 = vcmp.gt.f32.partialorder %v941_v28, %v945_v29  ;;  %v953_v12 = vmul.f32 0.8, %v941_v28 }
 0x5cb   :  { %vm1480_vm7 = vmpackc.low %vm946_vm6, %vm946_vm6  ;;  %v1471_v31 = vsel %vm946_vm6, 1.0, %v1924_v0 }
 0x5cc   :  { %1722 = vmatmul.mubr.msk.bf16.vlgmr.msra.gmra.mrb[20].mxu1 %vm1480_vm7, %v1927_v26  ;;  %vm1503_vm8 = vmpackc.low %vm946_vm6, %vm825_vm0  ;;  %v1064_v32 = vadd.f32 %v1471_v31, %v1063_v30  ;;  %v1061_v24 = vmul.f32 0.6, %v1471_v31 }
 0x5cd   :  { %1504 = vmatmul.mubr.msk.bf16.gmra.mrb[20].mxu0 %vm1503_vm8, %v1927_v26 }
 0x5ce   :  { %1241 = vmatprep.mubr.bf16.mxu0 %v1926_v61  ;;  %v1065_v14 = vmul.f32 0.1, %v1064_v32 }
 0x5e3   :  { %v1213_v20 = vpop.f32.mrb[12].mxu0 }
 0x5e4   :  { %v1282_v33 = vmul.f32 0.8, %v1213_v20  ;;  %v1215_v34 = vpop.f32.mrb[13].mxu0  ;;  %v1275_v36 = vmax.f32 %v1213_v20, 0.0 }
 0x5e5   :  { %v1273_v35 = vmul.f32 0.2, %v1215_v34  ;;  %v1217_v15 = vpop.f32.mrb[14].mxu0  ;;  %v1271_v40 = vmul.f32 0.1, %v1215_v34 }
 0x5e6   :  { %v1283_v37 = vadd.f32 %v1282_v33, %v1217_v15  ;;  %v1219_v38 = vpop.f32.mrb[15].mxu0  ;;  %v1066_v15 = vadd.f32 0.6, %v1065_v14 }
 0x5e7   :  { %v1274_v0 = vsub.f32 %v1215_v34, %v1273_v35  ;;  %v1276_v55 = vmax.f32 %v1271_v40, 0.0 }
 0x5e8   :  { %v1290_v39 = vmax.f32 %v1275_v36, %v1283_v37  ;;  %v1297_v42 = vmul.f32 0.8, %v1283_v37 }
 0x5e9   :  { %v1284_v41 = vadd.f32 %v1274_v0, %v1219_v38 }
 0x5eb   :  { %v1285_v43 = vsub.f32 %v1284_v41, %v1271_v40  ;;  %v1223_v44 = vpop.f32.mrb[16].mxu0  ;;  %v1288_v47 = vmul.f32 0.2, %v1284_v41 }
 0x5ec   :  { %v1298_v48 = vadd.f32 %v1297_v42, %v1223_v44  ;;  %v1225_v49 = vpop.f32.mrb[17].mxu0 }
 0x5ed   :  { %v1286_v50 = vmul.f32 0.1, %v1285_v43  ;;  %v1289_v61 = vsub.f32 %v1284_v41, %v1288_v47  ;;  %v1227_v51 = vpop.f32.mrb[18].mxu0 }
 0x5ee   :  { %v1305_v52 = vmax.f32 %v1290_v39, %v1298_v48  ;;  %v1312_v53 = vmul.f32 0.8, %v1298_v48  ;;  %v1229_v54 = vpop.f32.mrb[19].mxu0 }
 0x5ef   :  { %v1287_v56 = vadd.f32 %v1286_v50, %v1271_v40  ;;  %v1299_v57 = vadd.f32 %v1289_v61, %v1225_v49 }
 0x5f0   :  { %v1313_v58 = vadd.f32 %v1312_v53, %v1227_v51 }
 0x5f1   :  { %v1291_v59 = vmax.f32 %v1276_v55, %v1287_v56  ;;  %v1300_v60 = vsub.f32 %v1299_v57, %v1287_v56  ;;  %v1303_v18 = vmul.f32 0.2, %v1299_v57 }
 0x5f2   :  { %v1320_v62 = vmax.f32 %v1305_v52, %v1313_v58  ;;  %v1327_v45 = vmul.f32 0.8, %v1313_v58 }
 0x5f3   :  { %v1301_v63 = vmul.f32 0.1, %v1300_v60  ;;  %v1304_v1 = vsub.f32 %v1299_v57, %v1303_v18 }
 0x5f5   :  { %v1302_v2 = vadd.f32 %v1301_v63, %v1287_v56  ;;  %v1314_v3 = vadd.f32 %v1304_v1, %v1229_v54 }
 0x5f7   :  { %v1306_v4 = vmax.f32 %v1291_v59, %v1302_v2  ;;  %v1315_v7 = vsub.f32 %v1314_v3, %v1302_v2  ;;  %v1318_v11 = vmul.f32 0.2, %v1314_v3 }
 0x5f9   :  { %v1316_v8 = vmul.f32 0.1, %v1315_v7  ;;  %v1319_v13 = vsub.f32 %v1314_v3, %v1318_v11 }
 0x5fb   :  { %v1317_v9 = vadd.f32 %v1316_v8, %v1302_v2 }
 0x5fd   :  { %v1321_v10 = vmax.f32 %v1306_v4, %v1317_v9 }
 0x69f   :  { %v1053_v22 = vpop.f32.mrb[20].mxu1 }
 0x6a0   :  { %v1059_v46 = vadd.f32 %v1053_v22, %v953_v12  ;;  %v1233_v5 = vpop.f32.mrb[20].mxu0  ;;  %v1723_v6 = vpop.f32.mrb[21].mxu1 }
 0x6a1   :  { %v1328_v16 = vadd.f32 %v1327_v45, %v1233_v5  ;;  %v1235_v19 = vpop.f32.mrb[21].mxu0  ;;  %v1056_v21 = vpop.f32.mrb[22].mxu1 }
 0x6a2   :  { %v1060_v23 = vadd.f32 %v2068_v17, %v1059_v46  ;;  %v1329_v25 = vadd.f32 %v1319_v13, %v1235_v19  ;;  %v1237_v27 = vpop.f32.mrb[22].mxu0  ;;  %v1724_v29 = vpop.f32.mrb[23].mxu1 }
 0x6a3   :  { %v1335_v30 = vmax.f32 %v1320_v62, %v1328_v16  ;;  %v1342_v20 = vmul.f32 0.8, %v1328_v16  ;;  %v1239_v33 = vpop.f32.mrb[23].mxu0 }
 0x6a4   :  { %v1062_v28 = vsub.f32 %v1060_v23, %v1061_v24  ;;  %v1330_v34 = vsub.f32 %v1329_v25, %v1317_v9  ;;  %v1333_v35 = vmul.f32 0.2, %v1329_v25 }
 0x6a5   :  { %v1343_v36 = vadd.f32 %v1342_v20, %v1237_v27 }
 0x6a6   :  { %v1331_v37 = vmul.f32 0.1, %v1330_v34  ;;  %v1334_v38 = vsub.f32 %v1329_v25, %v1333_v35  ;;  %vm1067_vm9 = vcmp.gt.f32.partialorder %v1062_v28, %v1066_v15 }
 0x6a7   :  { %v1350_v32 = vmax.f32 %v1335_v30, %v1343_v36  ;;  %vm1505_vm10 = vmpackc.low %vm1067_vm9, %vm1067_vm9  ;;  %v1357_v44 = vmul.f32 0.8, %v1343_v36 }
 0x6a8   :  { %v1332_v0 = vadd.f32 %v1331_v37, %v1317_v9  ;;  %v1344_v39 = vadd.f32 %v1334_v38, %v1239_v33  ;;  %1506 = vmatmul.mubr.msk.bf16.gmra.mrb[24].mxu0 %vm1505_vm10, %v1927_v26 }
 0x6aa   :  { %v1345_v17 = vsub.f32 %v1344_v39, %v1332_v0  ;;  %v1336_v31 = vmax.f32 %v1321_v10, %v1332_v0  ;;  %v1348_v43 = vmul.f32 0.2, %v1344_v39 }
 0x6ac   :  { %v1346_v40 = vmul.f32 0.1, %v1345_v17  ;;  %v1349_v48 = vsub.f32 %v1344_v39, %v1348_v43 }
 0x6ae   :  { %v1347_v41 = vadd.f32 %v1346_v40, %v1332_v0 }
 0x6b0   :  { %v1351_v42 = vmax.f32 %v1336_v31, %v1347_v41 }
 0x77b   :  { %v1243_v47 = vpop.f32.mrb[24].mxu0 }
 0x77c   :  { %v1358_v49 = vadd.f32 %v1357_v44, %v1243_v47  ;;  %v1245_v50 = vpop.f32.mrb[25].mxu0 }
 0x77d   :  { %v1359_v61 = vadd.f32 %v1349_v48, %v1245_v50  ;;  %v1247_v51 = vpop.f32.mrb[26].mxu0 }
 0x77e   :  { %v1248_v52 = vpop.f32.mrb[27].mxu0  ;;  %v1363_v53 = vmax.f32 %v1350_v32, %v1358_v49 }
 0x77f   :  { %v1360_v54 = vsub.f32 %v1359_v61, %v1347_v41 }
 0x780   :  { %v1366_v55 = vsel %vm1365_vm11, %v1363_v53, -inf }
 0x781   :  { %v1361_v26 = vmul.f32 0.1, %v1360_v54  ;;  %1367 = vmax.xlane.f32.xlu0 %v1366_v55 }
 0x783   :  { %v1362_v56 = vadd.f32 %v1361_v26, %v1347_v41 }
 0x785   :  { %v1364_v57 = vmax.f32 %v1351_v42, %v1362_v56 }
 0x787   :  { %1379 = vst.msk [vmem:[%s2240_s5] sm:$0xff] %vm1378_vm12, %v1364_v57 }
 0x80e   :  { %v1368_v58 = vpop.xlane.xlu0 %1367 }
 0x80f   :  { %v1369_v59 = vsub.f32 %v1363_v53, %v1368_v58 }
 0x811   :  { %v1370_v60 = vmul.f32 1.442695, %v1369_v59 }
 0x813   :  { %1818 = vpow2.f32 %v1370_v60 }
 0x81d   :  { %v1819_v18 = vpop.eup %1818 }
 0x81e   :  { %v1372_v62 = vsel %vm1365_vm11, %v1819_v18, 0.0 }
 0x81f   :  { %1373 = vadd.xlane.f32.xlu0 %v1372_v62 }
 0x8ac   :  { %v1374_v63 = vpop.xlane.xlu0 %1373 }
 0x8ad   :  { %1820 = vrcp.f32 %v1374_v63 }
 0x8b7   :  { %v1821_v1 = vpop.eup %1820 }
 0x8b8   :  { %v1376_v2 = vmul.f32 %v1821_v1, %v1819_v18 }
 0x8ba   :  { %1377 = vst.msk [vmem:[%s2239_s4] sm:$0xff] %vm1365_vm11, %v1376_v2 }
 0x8bb   :  { %1388 = vsyncpa [#allocation7], 1 }
 0x8bc   :  { %1389 = vsyncpa [#allocation9], 1 }
 0x8bd   :  { %1390 = vsyncpa [#allocation12], 1 }

</bundles_post_ra>
